<compile_context>
chip_gen: v7x
topology: tpu7x:2x2x1
jax: 0.10.0
libtpu: 0.0.40
codegen_flags: <defaults>
</compile_context>

<pallas_src>
import math

import jax
import jax.numpy as jnp
from jax.experimental import pallas as pl
from jax.experimental.pallas import tpu as pltpu


def _erf(x):
    # Abramowitz & Stegun 7.1.26 polynomial (|err| < 1.5e-7).  The divide is
    # routed to the EUP via pl.reciprocal so the widest activation's GELU does
    # not occupy extra VALU slots.
    a1, a2, a3, a4, a5 = 0.254829592, -0.284496736, 1.421413741, -1.453152027, 1.061405429
    p = 0.3275911
    sgn = jnp.where(x >= 0.0, 1.0, -1.0)
    ax = jnp.abs(x)
    t = pl.reciprocal(1.0 + p * ax, approx=True)
    poly = ((((a5 * t + a4) * t + a3) * t + a2) * t + a1) * t
    return sgn * (1.0 - poly * jnp.exp(-ax * ax))


def _layernorm(x, w, b, eps=1e-5):
    mu = jnp.mean(x, axis=-1, keepdims=True)
    xc = x - mu
    var = jnp.mean(xc * xc, axis=-1, keepdims=True)
    return xc * jax.lax.rsqrt(var + eps) * w + b


def _block_kernel(x_ref, ln1w_ref, ln1b_ref,
                  w_attn_ref, b_attn_ref, er_t_ref,
                  w_cproj_ref, b_cproj_ref,
                  ln2w_ref, ln2b_ref,
                  w_fc_ref, b_fc_ref, w_mproj_ref, b_mproj_ref,
                  o_ref):
    f32, bf16 = jnp.float32, jnp.bfloat16
    x = x_ref[...]                              # (BT, L, D) f32
    BT, L, D = x.shape
    HS = er_t_ref.shape[0]
    H = D // HS
    scale = 1.0 / math.sqrt(HS)

    xf = x.reshape(BT * L, D)                   # batch folded into matmul M dim

    # ---- ln_1 (f32 on the VPU) ----
    h = _layernorm(xf, ln1w_ref[...], ln1b_ref[...])

    # ---- fused QKV projection: one (BT*L, D) x (D, 3D) bf16 MXU matmul ----
    qkv = jnp.dot(h.astype(bf16), w_attn_ref[...],
                  preferred_element_type=f32) + b_attn_ref[...]
    qkv_bf = qkv.astype(bf16)                   # cast once; reused by all heads

    er_t = er_t_ref[...]                        # (HS, L) bf16

    # ---- head-invariant masks (hoisted out of the head loop) ----
    row = jax.lax.broadcasted_iota(jnp.int32, (L, L), 0)
    col = jax.lax.broadcasted_iota(jnp.int32, (L, L), 1)
    causal = (col <= row)[None]                 # (1, L, L)
    shift_amt = (L - 1) - row                   # per-row skew() shift amount
    skew_stages = []                            # log2(L) (shift, select-mask) pairs
    t = 1
    while t < L:
        skew_stages.append((t, ((shift_amt & t) != 0)[None]))
        t *= 2

    head_outputs = []
    for hd in range(H):                         # small static head loop
        qb = qkv_bf[:, hd * HS:(hd + 1) * HS]                      # (BT*L, HS)
        kb = qkv_bf[:, D + hd * HS:D + (hd + 1) * HS]
        vb = qkv_bf[:, 2 * D + hd * HS:2 * D + (hd + 1) * HS]

        # Relative-position scores on the MXU: QEr = q @ Er_sliced.T
        qer = jnp.dot(qb, er_t, preferred_element_type=f32).reshape(BT, L, L)

        # skew(): Srel[b, i, j] = QEr[b, i, (L-1) + j - i] for j <= i.
        # Per-row left-rotation by (L-1-i) built from log2(L) uniform XLU lane
        # rotations (pltpu.roll) + selects.  Wrap-around garbage lands only at
        # j > i, which the causal mask (applied AFTER srel is added) removes.
        srel = qer
        for tt, take in skew_stages:
            srel = jnp.where(take, pltpu.roll(srel, L - tt, axis=2), srel)

        q3 = qb.reshape(BT, L, HS)
        k3 = kb.reshape(BT, L, HS)
        v3 = vb.reshape(BT, L, HS)
        qk = jnp.einsum('bqd,bkd->bqk', q3, k3, preferred_element_type=f32)

        att = (qk + srel) * scale
        att = jnp.where(causal, att, -1e30)
        att = att - jnp.max(att, axis=-1, keepdims=True)
        probs = jnp.exp(att)
        probs = probs * pl.reciprocal(
            jnp.sum(probs, axis=-1, keepdims=True), approx=True)
        y_h = jnp.einsum('bqk,bkd->bqd', probs.astype(bf16), v3,
                         preferred_element_type=f32)               # (BT, L, HS)
        head_outputs.append(y_h)

    # head concat + single (BT*L, D) x (D, D) output-projection matmul
    y = jnp.concatenate(head_outputs, axis=-1).reshape(BT * L, D)
    attn_out = jnp.dot(y.astype(bf16), w_cproj_ref[...],
                       preferred_element_type=f32) + b_cproj_ref[...]
    x1 = xf + attn_out

    # ---- ln_2 + MLP (exact erf GELU in f32, bf16 MXU operands) ----
    h2 = _layernorm(x1, ln2w_ref[...], ln2b_ref[...])
    m = jnp.dot(h2.astype(bf16), w_fc_ref[...],
                preferred_element_type=f32) + b_fc_ref[...]
    m = 0.5 * m * (1.0 + _erf(m * (1.0 / math.sqrt(2.0))))
    m = jnp.dot(m.astype(bf16), w_mproj_ref[...],
                preferred_element_type=f32) + b_mproj_ref[...]
    o_ref[...] = (x1 + m).reshape(BT, L, D).astype(o_ref.dtype)


def prepare_weights(params, *, seq_len, block_size):
    """Pre-cast / pre-slice the grid-invariant weights ONCE (outside the
    per-call path), in the dtypes/shapes the kernel consumes."""
    p = params
    f32, bf16 = jnp.float32, jnp.bfloat16
    D = p["w_cproj"].shape[0]
    # Er slice, transposed so QEr = q @ Er_sliced.T is one (M, HS)x(HS, L) matmul.
    er_t = p["Er"][block_size - seq_len:, :].T.astype(bf16)        # (HS, L)
    return (
        p["ln1_w"].reshape(1, D).astype(f32), p["ln1_b"].reshape(1, D).astype(f32),
        p["w_attn"].astype(bf16), p["b_attn"].reshape(1, 3 * D).astype(f32),
        er_t,
        p["w_cproj"].astype(bf16), p["b_cproj"].reshape(1, D).astype(f32),
        p["ln2_w"].reshape(1, D).astype(f32), p["ln2_b"].reshape(1, D).astype(f32),
        p["w_fc"].astype(bf16), p["b_fc"].reshape(1, 4 * D).astype(f32),
        p["w_mproj"].astype(bf16), p["b_mproj"].reshape(1, D).astype(f32),
    )


def _vmem_limit_bytes(batch_tile, L, D, HS):
    rows = batch_tile * L
    weights = 2 * (3 * D * D + D * D + 4 * D * D + 4 * D * D) + 2 * HS * L  # bf16, 1-buffered
    small = 4 * (2 * D + 3 * D + D + 2 * D + 4 * D + D)                     # f32 biases / LN
    stream = 2 * 2 * rows * D * 4                          # x + o, double-buffered f32
    acts = rows * (3 * D * 4 + 3 * D * 2 + 4 * D * 4 + 3 * D * 4)           # qkv/mlp/residual
    attn = batch_tile * L * L * 4 * 6                      # per-head score tensors in flight
    est = weights + small + stream + acts + attn
    # Note: v7x has only 64 MiB physical VMEM (v5e/v6e: 128 MiB) -- for large
    # configs pick batch_tile so this estimate stays <= ~56 MiB there.
    return int(min(max(2 * est, 32 * 1024 * 1024), 96 * 1024 * 1024))


def block_with_cache_forward(x, weights, *, batch_tile=None):
    """BlockWithCache.forward for layer_cache=None, return_kv=False, dropout=0."""
    B, L, D = x.shape
    HS = weights[4].shape[0]          # er_t is (HS, L)
    f32 = jnp.float32

    if batch_tile is None:
        # Target ~512 M-rows per grid step (amortizes ~0.35us/step overhead and
        # the MXU weight-load cadence), but keep >= 2 grid steps so both v7x
        # TensorCores get work under dimension_semantics=("parallel",).
        batch_tile = max(1, min(B, 512 // max(L, 1)))
        if B >= 2:
            batch_tile = min(batch_tile, max(1, B // 2))
    batch_tile = max(1, min(batch_tile, B))

    # Pad the batch (instead of shrinking batch_tile to 1) for awkward B.
    num_steps = -(-B // batch_tile)
    B_pad = num_steps * batch_tile
    x_in = x.astype(f32)
    if B_pad != B:
        x_in = jnp.pad(x_in, ((0, B_pad - B), (0, 0), (0, 0)))

    in_specs = [pl.BlockSpec((batch_tile, L, D), lambda b: (b, 0, 0))]
    for a in weights:
        # Weights / biases / Er never change across the grid: single-buffer them
        # so the (potentially tens-of-MB) bf16 weights are not held twice in VMEM.
        in_specs.append(
            pl.BlockSpec(a.shape, lambda b, nd=a.ndim: (0,) * nd,
                         pipeline_mode=pl.Buffered(1)))

    out = pl.pallas_call(
        _block_kernel,
        out_shape=jax.ShapeDtypeStruct((B_pad, L, D), f32),
        grid_spec=pltpu.PrefetchScalarGridSpec(
            num_scalar_prefetch=0,
            grid=(num_steps,),
            in_specs=in_specs,
            out_specs=pl.BlockSpec((batch_tile, L, D), lambda b: (b, 0, 0)),
        ),
        compiler_params=pltpu.CompilerParams(
            dimension_semantics=("parallel",),
            vmem_limit_bytes=_vmem_limit_bytes(batch_tile, L, D, HS),
        ),
    )(x_in, *weights)
    return out[:B] if B_pad != B else out


def reference_forward(x, p, *, n_head, block_size):
    """Pure-JAX transcription of the PyTorch forward (layer_cache=None)."""
    with jax.default_matmul_precision("highest"):
        B, L, D = x.shape
        HS = D // n_head

        def ln(h, w, b, eps=1e-5):
            mu = h.mean(-1, keepdims=True)
            var = ((h - mu) ** 2).mean(-1, keepdims=True)
            return (h - mu) / jnp.sqrt(var + eps) * w + b

        h = ln(x, p["ln1_w"], p["ln1_b"])
        qkv = h @ p["w_attn"] + p["b_attn"]
        q, k, v = jnp.split(qkv, 3, axis=-1)
        to_heads = lambda t: t.reshape(B, L, n_head, HS).transpose(0, 2, 1, 3)
        q, k, v = to_heads(q), to_heads(k), to_heads(v)

        er_t = p["Er"][block_size - L:, :].T                       # (HS, L)
        qer = q @ er_t                                             # (B, H, L, L)
        padded = jnp.pad(qer, ((0, 0), (0, 0), (0, 0), (1, 0)))
        srel = padded.reshape(B, n_head, L + 1, L)[:, :, 1:, :]    # skew()
        qk = q @ jnp.swapaxes(k, -1, -2)
        att = (qk + srel) * (1.0 / math.sqrt(HS))
        mask = jnp.tril(jnp.ones((L, L), dtype=bool))
        att = jnp.where(mask, att, -jnp.inf)
        att = jax.nn.softmax(att, axis=-1)
        y = att @ v
        y = y.transpose(0, 2, 1, 3).reshape(B, L, D)
        y = y @ p["w_cproj"] + p["b_cproj"]
        x = x + y
        h2 = ln(x, p["ln2_w"], p["ln2_b"])
        m = jax.nn.gelu(h2 @ p["w_fc"] + p["b_fc"], approximate=False)
        m = m @ p["w_mproj"] + p["b_mproj"]
        return x + m


def make_params(key, *, n_embd, n_head, block_size):
    D = n_embd
    HS = D // n_head
    ks = jax.random.split(key, 13)
    n = lambda k, shape, s=0.02: (s * jax.random.normal(k, shape)).astype(jnp.float32)
    return {
        "ln1_w": (1.0 + n(ks[0], (D,))),
        "ln1_b": n(ks[1], (D,)),
        "w_attn": n(ks[2], (D, 3 * D)),
        "b_attn": n(ks[3], (3 * D,)),
        "w_cproj": n(ks[4], (D, D)),
        "b_cproj": n(ks[5], (D,)),
        "Er": jax.random.normal(ks[6], (block_size, HS)).astype(jnp.float32),
        "ln2_w": (1.0 + n(ks[7], (D,))),
        "ln2_b": n(ks[8], (D,)),
        "w_fc": n(ks[9], (D, 4 * D)),
        "b_fc": n(ks[10], (4 * D,)),
        "w_mproj": n(ks[11], (4 * D, D)),
        "b_mproj": n(ks[12], (D,)),
    }


if __name__ == "__main__":
    # Config: n_embd=32, n_head=4 (hs=8), block_size=16, seq L=8, batch=2,
    # dropout=0.0 (identity), bias=True.
    B, L, D, H, BLOCK = 2, 8, 32, 4, 16
    key = jax.random.PRNGKey(0)
    kp, kx = jax.random.split(key)
    params = make_params(kp, n_embd=D, n_head=H, block_size=BLOCK)
    x = jax.random.normal(kx, (B, L, D), dtype=jnp.float32)

    weights = prepare_weights(params, seq_len=L, block_size=BLOCK)   # once, not per call
    out = block_with_cache_forward(x, weights)
    out = jax.block_until_ready(out)

    ref = reference_forward(x, params, n_head=H, block_size=BLOCK)
    assert out.shape == (B, L, D)
    # Kernel uses bf16 MXU operands with f32 accumulation (+ approx reciprocal
    # for softmax denom / erf divide); reference is f32 "highest".
    if not jnp.allclose(out, ref, atol=5e-3, rtol=1e-2):
        err = float(jnp.max(jnp.abs(out - ref)))
        raise AssertionError(f"Pallas kernel mismatches JAX reference (max abs err {err})")
    print("KERNEL_OK")
</pallas_src>

<mosaic_0001>
module attributes {stable_mosaic.version = 11 : i64} {
  func.func @_block_kernel(%arg0: i32, %arg1: memref<1x8x32xf32, #tpu.memory_space<vmem>>, %arg2: memref<1x32xf32, #tpu.memory_space<vmem>>, %arg3: memref<1x32xf32, #tpu.memory_space<vmem>>, %arg4: memref<32x96xbf16, #tpu.memory_space<vmem>>, %arg5: memref<1x96xf32, #tpu.memory_space<vmem>>, %arg6: memref<8x8xbf16, #tpu.memory_space<vmem>>, %arg7: memref<32x32xbf16, #tpu.memory_space<vmem>>, %arg8: memref<1x32xf32, #tpu.memory_space<vmem>>, %arg9: memref<1x32xf32, #tpu.memory_space<vmem>>, %arg10: memref<1x32xf32, #tpu.memory_space<vmem>>, %arg11: memref<32x128xbf16, #tpu.memory_space<vmem>>, %arg12: memref<1x128xf32, #tpu.memory_space<vmem>>, %arg13: memref<128x32xbf16, #tpu.memory_space<vmem>>, %arg14: memref<1x32xf32, #tpu.memory_space<vmem>>, %arg15: memref<1x8x32xf32, #tpu.memory_space<vmem>>) attributes {dimension_semantics = [#tpu.dimension_semantics<parallel>], iteration_bounds = array<i64: 2>, scalar_prefetch = 0 : i64, scratch_operands = 0 : i64, tpu.core_type = #tpu.core_type<tc>, window_params = [{transform_indices = @transform_0, window_bounds = array<i64: 1, 8, 32>}, {pipeline_mode = #tpu.pipeline_mode<synchronous>, transform_indices = @transform_1, window_bounds = array<i64: 1, 32>}, {pipeline_mode = #tpu.pipeline_mode<synchronous>, transform_indices = @transform_2, window_bounds = array<i64: 1, 32>}, {pipeline_mode = #tpu.pipeline_mode<synchronous>, transform_indices = @transform_3, window_bounds = array<i64: 32, 96>}, {pipeline_mode = #tpu.pipeline_mode<synchronous>, transform_indices = @transform_4, window_bounds = array<i64: 1, 96>}, {pipeline_mode = #tpu.pipeline_mode<synchronous>, transform_indices = @transform_5, window_bounds = array<i64: 8, 8>}, {pipeline_mode = #tpu.pipeline_mode<synchronous>, transform_indices = @transform_6, window_bounds = array<i64: 32, 32>}, {pipeline_mode = #tpu.pipeline_mode<synchronous>, transform_indices = @transform_7, window_bounds = array<i64: 1, 32>}, {pipeline_mode = #tpu.pipeline_mode<synchronous>, transform_indices = @transform_8, window_bounds = array<i64: 1, 32>}, {pipeline_mode = #tpu.pipeline_mode<synchronous>, transform_indices = @transform_9, window_bounds = array<i64: 1, 32>}, {pipeline_mode = #tpu.pipeline_mode<synchronous>, transform_indices = @transform_10, window_bounds = array<i64: 32, 128>}, {pipeline_mode = #tpu.pipeline_mode<synchronous>, transform_indices = @transform_11, window_bounds = array<i64: 1, 128>}, {pipeline_mode = #tpu.pipeline_mode<synchronous>, transform_indices = @transform_12, window_bounds = array<i64: 128, 32>}, {pipeline_mode = #tpu.pipeline_mode<synchronous>, transform_indices = @transform_13, window_bounds = array<i64: 1, 32>}, {transform_indices = @transform_14, window_bounds = array<i64: 1, 8, 32>}]} {
    %c0 = arith.constant 0 : index
    %c0_0 = arith.constant 0 : index
    %c0_1 = arith.constant 0 : index
    %0 = vector.load %arg1[%c0, %c0_0, %c0_1] : memref<1x8x32xf32, #tpu.memory_space<vmem>>, vector<1x8x32xf32>
    %1 = vector.shape_cast %0 : vector<1x8x32xf32> to vector<8x32xf32>
    %c0_2 = arith.constant 0 : index
    %c0_3 = arith.constant 0 : index
    %2 = vector.load %arg2[%c0_2, %c0_3] : memref<1x32xf32, #tpu.memory_space<vmem>>, vector<1x32xf32>
    %c0_4 = arith.constant 0 : index
    %c0_5 = arith.constant 0 : index
    %3 = vector.load %arg3[%c0_4, %c0_5] : memref<1x32xf32, #tpu.memory_space<vmem>>, vector<1x32xf32>
    %cst = arith.constant dense<0.000000e+00> : vector<8xf32>
    %4 = vector.multi_reduction <add>, %1, %cst [1] : vector<8x32xf32> to vector<8xf32>
    %5 = vector.shape_cast %4 : vector<8xf32> to vector<8x1xf32>
    %cst_6 = arith.constant 3.200000e+01 : f32
    %6 = vector.broadcast %cst_6 : f32 to vector<8x1xf32>
    %7 = arith.divf %5, %6 : vector<8x1xf32>
    %8 = vector.broadcast %7 : vector<8x1xf32> to vector<8x32xf32>
    %9 = arith.subf %1, %8 : vector<8x32xf32>
    %10 = arith.mulf %9, %9 : vector<8x32xf32>
    %cst_7 = arith.constant dense<0.000000e+00> : vector<8xf32>
    %11 = vector.multi_reduction <add>, %10, %cst_7 [1] : vector<8x32xf32> to vector<8xf32>
    %12 = vector.shape_cast %11 : vector<8xf32> to vector<8x1xf32>
    %cst_8 = arith.constant 3.200000e+01 : f32
    %13 = vector.broadcast %cst_8 : f32 to vector<8x1xf32>
    %14 = arith.divf %12, %13 : vector<8x1xf32>
    %cst_9 = arith.constant 9.99999974E-6 : f32
    %15 = vector.broadcast %cst_9 : f32 to vector<8x1xf32>
    %16 = arith.addf %14, %15 : vector<8x1xf32>
    %17 = math.rsqrt %16 : vector<8x1xf32>
    %18 = vector.broadcast %17 : vector<8x1xf32> to vector<8x32xf32>
    %19 = arith.mulf %9, %18 : vector<8x32xf32>
    %20 = vector.broadcast %2 : vector<1x32xf32> to vector<8x32xf32>
    %21 = arith.mulf %19, %20 : vector<8x32xf32>
    %22 = vector.broadcast %3 : vector<1x32xf32> to vector<8x32xf32>
    %23 = arith.addf %21, %22 : vector<8x32xf32>
    %24 = arith.truncf %23 : vector<8x32xf32> to vector<8x32xbf16>
    %c0_10 = arith.constant 0 : index
    %c0_11 = arith.constant 0 : index
    %25 = vector.load %arg4[%c0_10, %c0_11] : memref<32x96xbf16, #tpu.memory_space<vmem>>, vector<32x96xbf16>
    %cst_12 = arith.constant dense<0.000000e+00> : vector<8x96xf32>
    %26 = tpu.matmul %24, %25, %cst_12 {dimension_numbers = #tpu.dot_dimension_numbers<[1], [0], [0], [1], [0, 0, 1, 1], [], []>} : vector<8x32xbf16>, vector<32x96xbf16>, vector<8x96xf32> -> vector<8x96xf32>
    %c0_13 = arith.constant 0 : index
    %c0_14 = arith.constant 0 : index
    %27 = vector.load %arg5[%c0_13, %c0_14] : memref<1x96xf32, #tpu.memory_space<vmem>>, vector<1x96xf32>
    %28 = vector.broadcast %27 : vector<1x96xf32> to vector<8x96xf32>
    %29 = arith.addf %26, %28 : vector<8x96xf32>
    %30 = arith.truncf %29 : vector<8x96xf32> to vector<8x96xbf16>
    %c0_15 = arith.constant 0 : index
    %c0_16 = arith.constant 0 : index
    %31 = vector.load %arg6[%c0_15, %c0_16] : memref<8x8xbf16, #tpu.memory_space<vmem>>, vector<8x8xbf16>
    %32 = tpu.iota {dimensions = array<i32: 0>} : vector<8x8xi32>
    %33 = tpu.iota {dimensions = array<i32: 1>} : vector<8x8xi32>
    %34 = arith.cmpi sle, %33, %32 : vector<8x8xi32>
    %35 = vector.shape_cast %34 : vector<8x8xi1> to vector<1x8x8xi1>
    %c7_i32 = arith.constant 7 : i32
    %36 = vector.broadcast %c7_i32 : i32 to vector<8x8xi32>
    %37 = arith.subi %36, %32 : vector<8x8xi32>
    %c1_i32 = arith.constant 1 : i32
    %38 = vector.broadcast %c1_i32 : i32 to vector<8x8xi32>
    %39 = arith.andi %37, %38 : vector<8x8xi32>
    %c0_i32 = arith.constant 0 : i32
    %40 = vector.broadcast %c0_i32 : i32 to vector<8x8xi32>
    %41 = arith.cmpi ne, %39, %40 : vector<8x8xi32>
    %42 = vector.shape_cast %41 : vector<8x8xi1> to vector<1x8x8xi1>
    %c2_i32 = arith.constant 2 : i32
    %43 = vector.broadcast %c2_i32 : i32 to vector<8x8xi32>
    %44 = arith.andi %37, %43 : vector<8x8xi32>
    %c0_i32_17 = arith.constant 0 : i32
    %45 = vector.broadcast %c0_i32_17 : i32 to vector<8x8xi32>
    %46 = arith.cmpi ne, %44, %45 : vector<8x8xi32>
    %47 = vector.shape_cast %46 : vector<8x8xi1> to vector<1x8x8xi1>
    %c4_i32 = arith.constant 4 : i32
    %48 = vector.broadcast %c4_i32 : i32 to vector<8x8xi32>
    %49 = arith.andi %37, %48 : vector<8x8xi32>
    %c0_i32_18 = arith.constant 0 : i32
    %50 = vector.broadcast %c0_i32_18 : i32 to vector<8x8xi32>
    %51 = arith.cmpi ne, %49, %50 : vector<8x8xi32>
    %52 = vector.shape_cast %51 : vector<8x8xi1> to vector<1x8x8xi1>
    %53 = vector.extract_strided_slice %30 {offsets = [0, 0], sizes = [8, 8], strides = [1, 1]} : vector<8x96xbf16> to vector<8x8xbf16>
    %54 = vector.extract_strided_slice %30 {offsets = [0, 32], sizes = [8, 8], strides = [1, 1]} : vector<8x96xbf16> to vector<8x8xbf16>
    %55 = vector.extract_strided_slice %30 {offsets = [0, 64], sizes = [8, 8], strides = [1, 1]} : vector<8x96xbf16> to vector<8x8xbf16>
    %cst_19 = arith.constant dense<0.000000e+00> : vector<8x8xf32>
    %56 = tpu.matmul %53, %31, %cst_19 {dimension_numbers = #tpu.dot_dimension_numbers<[1], [0], [0], [1], [0, 0, 1, 1], [], []>} : vector<8x8xbf16>, vector<8x8xbf16>, vector<8x8xf32> -> vector<8x8xf32>
    %57 = vector.shape_cast %56 : vector<8x8xf32> to vector<1x8x8xf32>
    %c7_i32_20 = arith.constant 7 : i32
    %58 = tpu.dynamic_rotate %57 by %c7_i32_20 dim 2 : vector<1x8x8xf32>, i32 -> vector<1x8x8xf32>
    %59 = arith.select %42, %58, %57 : vector<1x8x8xi1>, vector<1x8x8xf32>
    %c6_i32 = arith.constant 6 : i32
    %60 = tpu.dynamic_rotate %59 by %c6_i32 dim 2 : vector<1x8x8xf32>, i32 -> vector<1x8x8xf32>
    %61 = arith.select %47, %60, %59 : vector<1x8x8xi1>, vector<1x8x8xf32>
    %c4_i32_21 = arith.constant 4 : i32
    %62 = tpu.dynamic_rotate %61 by %c4_i32_21 dim 2 : vector<1x8x8xf32>, i32 -> vector<1x8x8xf32>
    %63 = arith.select %52, %62, %61 : vector<1x8x8xi1>, vector<1x8x8xf32>
    %64 = vector.shape_cast %53 : vector<8x8xbf16> to vector<1x8x8xbf16>
    %65 = vector.shape_cast %54 : vector<8x8xbf16> to vector<1x8x8xbf16>
    %66 = vector.shape_cast %55 : vector<8x8xbf16> to vector<1x8x8xbf16>
    "tpu.trace_start"() <{level = 10 : i32, message = "bqd,bkd->bqk"}> : () -> ()
    %cst_22 = arith.constant dense<0.000000e+00> : vector<1x8x8xf32>
    %67 = tpu.matmul %64, %65, %cst_22 {dimension_numbers = #tpu.dot_dimension_numbers<[2], [2], [1], [1], [0, 0, 0, 1, 1, 1], [0], [0]>} : vector<1x8x8xbf16>, vector<1x8x8xbf16>, vector<1x8x8xf32> -> vector<1x8x8xf32>
    "tpu.trace_stop"() : () -> ()
    %68 = arith.addf %67, %63 : vector<1x8x8xf32>
    %cst_23 = arith.constant 0.353553385 : f32
    %69 = vector.broadcast %cst_23 : f32 to vector<1x8x8xf32>
    %70 = arith.mulf %68, %69 : vector<1x8x8xf32>
    %cst_24 = arith.constant -1.000000e+30 : f32
    %71 = vector.broadcast %cst_24 : f32 to vector<1x8x8xf32>
    %72 = arith.select %35, %70, %71 : vector<1x8x8xi1>, vector<1x8x8xf32>
    %cst_25 = arith.constant dense<0xFF800000> : vector<1x8xf32>
    %73 = vector.multi_reduction <maximumf>, %72, %cst_25 [2] : vector<1x8x8xf32> to vector<1x8xf32>
    %74 = vector.shape_cast %73 : vector<1x8xf32> to vector<1x8x1xf32>
    %75 = vector.broadcast %74 : vector<1x8x1xf32> to vector<1x8x8xf32>
    %76 = arith.subf %72, %75 : vector<1x8x8xf32>
    %77 = math.exp %76 : vector<1x8x8xf32>
    %cst_26 = arith.constant dense<0.000000e+00> : vector<1x8xf32>
    %78 = vector.multi_reduction <add>, %77, %cst_26 [2] : vector<1x8x8xf32> to vector<1x8xf32>
    %79 = vector.shape_cast %78 : vector<1x8xf32> to vector<1x8x1xf32>
    %80 = tpu.reciprocal %79 {approx = true} : vector<1x8x1xf32> -> vector<1x8x1xf32>
    %81 = vector.broadcast %80 : vector<1x8x1xf32> to vector<1x8x8xf32>
    %82 = arith.mulf %77, %81 : vector<1x8x8xf32>
    %83 = arith.truncf %82 : vector<1x8x8xf32> to vector<1x8x8xbf16>
    "tpu.trace_start"() <{level = 10 : i32, message = "bqk,bkd->bqd"}> : () -> ()
    %cst_27 = arith.constant dense<0.000000e+00> : vector<1x8x8xf32>
    %84 = tpu.matmul %83, %66, %cst_27 {dimension_numbers = #tpu.dot_dimension_numbers<[2], [1], [1], [2], [0, 0, 0, 1, 1, 2], [0], [0]>} : vector<1x8x8xbf16>, vector<1x8x8xbf16>, vector<1x8x8xf32> -> vector<1x8x8xf32>
    "tpu.trace_stop"() : () -> ()
    %85 = vector.extract_strided_slice %30 {offsets = [0, 8], sizes = [8, 8], strides = [1, 1]} : vector<8x96xbf16> to vector<8x8xbf16>
    %86 = vector.extract_strided_slice %30 {offsets = [0, 40], sizes = [8, 8], strides = [1, 1]} : vector<8x96xbf16> to vector<8x8xbf16>
    %87 = vector.extract_strided_slice %30 {offsets = [0, 72], sizes = [8, 8], strides = [1, 1]} : vector<8x96xbf16> to vector<8x8xbf16>
    %cst_28 = arith.constant dense<0.000000e+00> : vector<8x8xf32>
    %88 = tpu.matmul %85, %31, %cst_28 {dimension_numbers = #tpu.dot_dimension_numbers<[1], [0], [0], [1], [0, 0, 1, 1], [], []>} : vector<8x8xbf16>, vector<8x8xbf16>, vector<8x8xf32> -> vector<8x8xf32>
    %89 = vector.shape_cast %88 : vector<8x8xf32> to vector<1x8x8xf32>
    %c7_i32_29 = arith.constant 7 : i32
    %90 = tpu.dynamic_rotate %89 by %c7_i32_29 dim 2 : vector<1x8x8xf32>, i32 -> vector<1x8x8xf32>
    %91 = arith.select %42, %90, %89 : vector<1x8x8xi1>, vector<1x8x8xf32>
    %c6_i32_30 = arith.constant 6 : i32
    %92 = tpu.dynamic_rotate %91 by %c6_i32_30 dim 2 : vector<1x8x8xf32>, i32 -> vector<1x8x8xf32>
    %93 = arith.select %47, %92, %91 : vector<1x8x8xi1>, vector<1x8x8xf32>
    %c4_i32_31 = arith.constant 4 : i32
    %94 = tpu.dynamic_rotate %93 by %c4_i32_31 dim 2 : vector<1x8x8xf32>, i32 -> vector<1x8x8xf32>
    %95 = arith.select %52, %94, %93 : vector<1x8x8xi1>, vector<1x8x8xf32>
    %96 = vector.shape_cast %85 : vector<8x8xbf16> to vector<1x8x8xbf16>
    %97 = vector.shape_cast %86 : vector<8x8xbf16> to vector<1x8x8xbf16>
    %98 = vector.shape_cast %87 : vector<8x8xbf16> to vector<1x8x8xbf16>
    "tpu.trace_start"() <{level = 10 : i32, message = "bqd,bkd->bqk"}> : () -> ()
    %cst_32 = arith.constant dense<0.000000e+00> : vector<1x8x8xf32>
    %99 = tpu.matmul %96, %97, %cst_32 {dimension_numbers = #tpu.dot_dimension_numbers<[2], [2], [1], [1], [0, 0, 0, 1, 1, 1], [0], [0]>} : vector<1x8x8xbf16>, vector<1x8x8xbf16>, vector<1x8x8xf32> -> vector<1x8x8xf32>
    "tpu.trace_stop"() : () -> ()
    %100 = arith.addf %99, %95 : vector<1x8x8xf32>
    %cst_33 = arith.constant 0.353553385 : f32
    %101 = vector.broadcast %cst_33 : f32 to vector<1x8x8xf32>
    %102 = arith.mulf %100, %101 : vector<1x8x8xf32>
    %cst_34 = arith.constant -1.000000e+30 : f32
    %103 = vector.broadcast %cst_34 : f32 to vector<1x8x8xf32>
    %104 = arith.select %35, %102, %103 : vector<1x8x8xi1>, vector<1x8x8xf32>
    %cst_35 = arith.constant dense<0xFF800000> : vector<1x8xf32>
    %105 = vector.multi_reduction <maximumf>, %104, %cst_35 [2] : vector<1x8x8xf32> to vector<1x8xf32>
    %106 = vector.shape_cast %105 : vector<1x8xf32> to vector<1x8x1xf32>
    %107 = vector.broadcast %106 : vector<1x8x1xf32> to vector<1x8x8xf32>
    %108 = arith.subf %104, %107 : vector<1x8x8xf32>
    %109 = math.exp %108 : vector<1x8x8xf32>
    %cst_36 = arith.constant dense<0.000000e+00> : vector<1x8xf32>
    %110 = vector.multi_reduction <add>, %109, %cst_36 [2] : vector<1x8x8xf32> to vector<1x8xf32>
    %111 = vector.shape_cast %110 : vector<1x8xf32> to vector<1x8x1xf32>
    %112 = tpu.reciprocal %111 {approx = true} : vector<1x8x1xf32> -> vector<1x8x1xf32>
    %113 = vector.broadcast %112 : vector<1x8x1xf32> to vector<1x8x8xf32>
    %114 = arith.mulf %109, %113 : vector<1x8x8xf32>
    %115 = arith.truncf %114 : vector<1x8x8xf32> to vector<1x8x8xbf16>
    "tpu.trace_start"() <{level = 10 : i32, message = "bqk,bkd->bqd"}> : () -> ()
    %cst_37 = arith.constant dense<0.000000e+00> : vector<1x8x8xf32>
    %116 = tpu.matmul %115, %98, %cst_37 {dimension_numbers = #tpu.dot_dimension_numbers<[2], [1], [1], [2], [0, 0, 0, 1, 1, 2], [0], [0]>} : vector<1x8x8xbf16>, vector<1x8x8xbf16>, vector<1x8x8xf32> -> vector<1x8x8xf32>
    "tpu.trace_stop"() : () -> ()
    %117 = vector.extract_strided_slice %30 {offsets = [0, 16], sizes = [8, 8], strides = [1, 1]} : vector<8x96xbf16> to vector<8x8xbf16>
    %118 = vector.extract_strided_slice %30 {offsets = [0, 48], sizes = [8, 8], strides = [1, 1]} : vector<8x96xbf16> to vector<8x8xbf16>
    %119 = vector.extract_strided_slice %30 {offsets = [0, 80], sizes = [8, 8], strides = [1, 1]} : vector<8x96xbf16> to vector<8x8xbf16>
    %cst_38 = arith.constant dense<0.000000e+00> : vector<8x8xf32>
    %120 = tpu.matmul %117, %31, %cst_38 {dimension_numbers = #tpu.dot_dimension_numbers<[1], [0], [0], [1], [0, 0, 1, 1], [], []>} : vector<8x8xbf16>, vector<8x8xbf16>, vector<8x8xf32> -> vector<8x8xf32>
    %121 = vector.shape_cast %120 : vector<8x8xf32> to vector<1x8x8xf32>
    %c7_i32_39 = arith.constant 7 : i32
    %122 = tpu.dynamic_rotate %121 by %c7_i32_39 dim 2 : vector<1x8x8xf32>, i32 -> vector<1x8x8xf32>
    %123 = arith.select %42, %122, %121 : vector<1x8x8xi1>, vector<1x8x8xf32>
    %c6_i32_40 = arith.constant 6 : i32
    %124 = tpu.dynamic_rotate %123 by %c6_i32_40 dim 2 : vector<1x8x8xf32>, i32 -> vector<1x8x8xf32>
    %125 = arith.select %47, %124, %123 : vector<1x8x8xi1>, vector<1x8x8xf32>
    %c4_i32_41 = arith.constant 4 : i32
    %126 = tpu.dynamic_rotate %125 by %c4_i32_41 dim 2 : vector<1x8x8xf32>, i32 -> vector<1x8x8xf32>
    %127 = arith.select %52, %126, %125 : vector<1x8x8xi1>, vector<1x8x8xf32>
    %128 = vector.shape_cast %117 : vector<8x8xbf16> to vector<1x8x8xbf16>
    %129 = vector.shape_cast %118 : vector<8x8xbf16> to vector<1x8x8xbf16>
    %130 = vector.shape_cast %119 : vector<8x8xbf16> to vector<1x8x8xbf16>
    "tpu.trace_start"() <{level = 10 : i32, message = "bqd,bkd->bqk"}> : () -> ()
    %cst_42 = arith.constant dense<0.000000e+00> : vector<1x8x8xf32>
    %131 = tpu.matmul %128, %129, %cst_42 {dimension_numbers = #tpu.dot_dimension_numbers<[2], [2], [1], [1], [0, 0, 0, 1, 1, 1], [0], [0]>} : vector<1x8x8xbf16>, vector<1x8x8xbf16>, vector<1x8x8xf32> -> vector<1x8x8xf32>
    "tpu.trace_stop"() : () -> ()
    %132 = arith.addf %131, %127 : vector<1x8x8xf32>
    %cst_43 = arith.constant 0.353553385 : f32
    %133 = vector.broadcast %cst_43 : f32 to vector<1x8x8xf32>
    %134 = arith.mulf %132, %133 : vector<1x8x8xf32>
    %cst_44 = arith.constant -1.000000e+30 : f32
    %135 = vector.broadcast %cst_44 : f32 to vector<1x8x8xf32>
    %136 = arith.select %35, %134, %135 : vector<1x8x8xi1>, vector<1x8x8xf32>
    %cst_45 = arith.constant dense<0xFF800000> : vector<1x8xf32>
    %137 = vector.multi_reduction <maximumf>, %136, %cst_45 [2] : vector<1x8x8xf32> to vector<1x8xf32>
    %138 = vector.shape_cast %137 : vector<1x8xf32> to vector<1x8x1xf32>
    %139 = vector.broadcast %138 : vector<1x8x1xf32> to vector<1x8x8xf32>
    %140 = arith.subf %136, %139 : vector<1x8x8xf32>
    %141 = math.exp %140 : vector<1x8x8xf32>
    %cst_46 = arith.constant dense<0.000000e+00> : vector<1x8xf32>
    %142 = vector.multi_reduction <add>, %141, %cst_46 [2] : vector<1x8x8xf32> to vector<1x8xf32>
    %143 = vector.shape_cast %142 : vector<1x8xf32> to vector<1x8x1xf32>
    %144 = tpu.reciprocal %143 {approx = true} : vector<1x8x1xf32> -> vector<1x8x1xf32>
    %145 = vector.broadcast %144 : vector<1x8x1xf32> to vector<1x8x8xf32>
    %146 = arith.mulf %141, %145 : vector<1x8x8xf32>
    %147 = arith.truncf %146 : vector<1x8x8xf32> to vector<1x8x8xbf16>
    "tpu.trace_start"() <{level = 10 : i32, message = "bqk,bkd->bqd"}> : () -> ()
    %cst_47 = arith.constant dense<0.000000e+00> : vector<1x8x8xf32>
    %148 = tpu.matmul %147, %130, %cst_47 {dimension_numbers = #tpu.dot_dimension_numbers<[2], [1], [1], [2], [0, 0, 0, 1, 1, 2], [0], [0]>} : vector<1x8x8xbf16>, vector<1x8x8xbf16>, vector<1x8x8xf32> -> vector<1x8x8xf32>
    "tpu.trace_stop"() : () -> ()
    %149 = vector.extract_strided_slice %30 {offsets = [0, 24], sizes = [8, 8], strides = [1, 1]} : vector<8x96xbf16> to vector<8x8xbf16>
    %150 = vector.extract_strided_slice %30 {offsets = [0, 56], sizes = [8, 8], strides = [1, 1]} : vector<8x96xbf16> to vector<8x8xbf16>
    %151 = vector.extract_strided_slice %30 {offsets = [0, 88], sizes = [8, 8], strides = [1, 1]} : vector<8x96xbf16> to vector<8x8xbf16>
    %cst_48 = arith.constant dense<0.000000e+00> : vector<8x8xf32>
    %152 = tpu.matmul %149, %31, %cst_48 {dimension_numbers = #tpu.dot_dimension_numbers<[1], [0], [0], [1], [0, 0, 1, 1], [], []>} : vector<8x8xbf16>, vector<8x8xbf16>, vector<8x8xf32> -> vector<8x8xf32>
    %153 = vector.shape_cast %152 : vector<8x8xf32> to vector<1x8x8xf32>
    %c7_i32_49 = arith.constant 7 : i32
    %154 = tpu.dynamic_rotate %153 by %c7_i32_49 dim 2 : vector<1x8x8xf32>, i32 -> vector<1x8x8xf32>
    %155 = arith.select %42, %154, %153 : vector<1x8x8xi1>, vector<1x8x8xf32>
    %c6_i32_50 = arith.constant 6 : i32
    %156 = tpu.dynamic_rotate %155 by %c6_i32_50 dim 2 : vector<1x8x8xf32>, i32 -> vector<1x8x8xf32>
    %157 = arith.select %47, %156, %155 : vector<1x8x8xi1>, vector<1x8x8xf32>
    %c4_i32_51 = arith.constant 4 : i32
    %158 = tpu.dynamic_rotate %157 by %c4_i32_51 dim 2 : vector<1x8x8xf32>, i32 -> vector<1x8x8xf32>
    %159 = arith.select %52, %158, %157 : vector<1x8x8xi1>, vector<1x8x8xf32>
    %160 = vector.shape_cast %149 : vector<8x8xbf16> to vector<1x8x8xbf16>
    %161 = vector.shape_cast %150 : vector<8x8xbf16> to vector<1x8x8xbf16>
    %162 = vector.shape_cast %151 : vector<8x8xbf16> to vector<1x8x8xbf16>
    "tpu.trace_start"() <{level = 10 : i32, message = "bqd,bkd->bqk"}> : () -> ()
    %cst_52 = arith.constant dense<0.000000e+00> : vector<1x8x8xf32>
    %163 = tpu.matmul %160, %161, %cst_52 {dimension_numbers = #tpu.dot_dimension_numbers<[2], [2], [1], [1], [0, 0, 0, 1, 1, 1], [0], [0]>} : vector<1x8x8xbf16>, vector<1x8x8xbf16>, vector<1x8x8xf32> -> vector<1x8x8xf32>
    "tpu.trace_stop"() : () -> ()
    %164 = arith.addf %163, %159 : vector<1x8x8xf32>
    %cst_53 = arith.constant 0.353553385 : f32
    %165 = vector.broadcast %cst_53 : f32 to vector<1x8x8xf32>
    %166 = arith.mulf %164, %165 : vector<1x8x8xf32>
    %cst_54 = arith.constant -1.000000e+30 : f32
    %167 = vector.broadcast %cst_54 : f32 to vector<1x8x8xf32>
    %168 = arith.select %35, %166, %167 : vector<1x8x8xi1>, vector<1x8x8xf32>
    %cst_55 = arith.constant dense<0xFF800000> : vector<1x8xf32>
    %169 = vector.multi_reduction <maximumf>, %168, %cst_55 [2] : vector<1x8x8xf32> to vector<1x8xf32>
    %170 = vector.shape_cast %169 : vector<1x8xf32> to vector<1x8x1xf32>
    %171 = vector.broadcast %170 : vector<1x8x1xf32> to vector<1x8x8xf32>
    %172 = arith.subf %168, %171 : vector<1x8x8xf32>
    %173 = math.exp %172 : vector<1x8x8xf32>
    %cst_56 = arith.constant dense<0.000000e+00> : vector<1x8xf32>
    %174 = vector.multi_reduction <add>, %173, %cst_56 [2] : vector<1x8x8xf32> to vector<1x8xf32>
    %175 = vector.shape_cast %174 : vector<1x8xf32> to vector<1x8x1xf32>
    %176 = tpu.reciprocal %175 {approx = true} : vector<1x8x1xf32> -> vector<1x8x1xf32>
    %177 = vector.broadcast %176 : vector<1x8x1xf32> to vector<1x8x8xf32>
    %178 = arith.mulf %173, %177 : vector<1x8x8xf32>
    %179 = arith.truncf %178 : vector<1x8x8xf32> to vector<1x8x8xbf16>
    "tpu.trace_start"() <{level = 10 : i32, message = "bqk,bkd->bqd"}> : () -> ()
    %cst_57 = arith.constant dense<0.000000e+00> : vector<1x8x8xf32>
    %180 = tpu.matmul %179, %162, %cst_57 {dimension_numbers = #tpu.dot_dimension_numbers<[2], [1], [1], [2], [0, 0, 0, 1, 1, 2], [0], [0]>} : vector<1x8x8xbf16>, vector<1x8x8xbf16>, vector<1x8x8xf32> -> vector<1x8x8xf32>
    "tpu.trace_stop"() : () -> ()
    %181 = tpu.concatenate %84, %116, %148, %180 in 2 : vector<1x8x8xf32>, vector<1x8x8xf32>, vector<1x8x8xf32>, vector<1x8x8xf32> -> vector<1x8x32xf32>
    %182 = vector.shape_cast %181 : vector<1x8x32xf32> to vector<8x32xf32>
    %183 = arith.truncf %182 : vector<8x32xf32> to vector<8x32xbf16>
    %c0_58 = arith.constant 0 : index
    %c0_59 = arith.constant 0 : index
    %184 = vector.load %arg7[%c0_58, %c0_59] : memref<32x32xbf16, #tpu.memory_space<vmem>>, vector<32x32xbf16>
    %cst_60 = arith.constant dense<0.000000e+00> : vector<8x32xf32>
    %185 = tpu.matmul %183, %184, %cst_60 {dimension_numbers = #tpu.dot_dimension_numbers<[1], [0], [0], [1], [0, 0, 1, 1], [], []>} : vector<8x32xbf16>, vector<32x32xbf16>, vector<8x32xf32> -> vector<8x32xf32>
    %c0_61 = arith.constant 0 : index
    %c0_62 = arith.constant 0 : index
    %186 = vector.load %arg8[%c0_61, %c0_62] : memref<1x32xf32, #tpu.memory_space<vmem>>, vector<1x32xf32>
    %187 = vector.broadcast %186 : vector<1x32xf32> to vector<8x32xf32>
    %188 = arith.addf %185, %187 : vector<8x32xf32>
    %189 = arith.addf %1, %188 : vector<8x32xf32>
    %c0_63 = arith.constant 0 : index
    %c0_64 = arith.constant 0 : index
    %190 = vector.load %arg9[%c0_63, %c0_64] : memref<1x32xf32, #tpu.memory_space<vmem>>, vector<1x32xf32>
    %c0_65 = arith.constant 0 : index
    %c0_66 = arith.constant 0 : index
    %191 = vector.load %arg10[%c0_65, %c0_66] : memref<1x32xf32, #tpu.memory_space<vmem>>, vector<1x32xf32>
    %cst_67 = arith.constant dense<0.000000e+00> : vector<8xf32>
    %192 = vector.multi_reduction <add>, %189, %cst_67 [1] : vector<8x32xf32> to vector<8xf32>
    %193 = vector.shape_cast %192 : vector<8xf32> to vector<8x1xf32>
    %cst_68 = arith.constant 3.200000e+01 : f32
    %194 = vector.broadcast %cst_68 : f32 to vector<8x1xf32>
    %195 = arith.divf %193, %194 : vector<8x1xf32>
    %196 = vector.broadcast %195 : vector<8x1xf32> to vector<8x32xf32>
    %197 = arith.subf %189, %196 : vector<8x32xf32>
    %198 = arith.mulf %197, %197 : vector<8x32xf32>
    %cst_69 = arith.constant dense<0.000000e+00> : vector<8xf32>
    %199 = vector.multi_reduction <add>, %198, %cst_69 [1] : vector<8x32xf32> to vector<8xf32>
    %200 = vector.shape_cast %199 : vector<8xf32> to vector<8x1xf32>
    %cst_70 = arith.constant 3.200000e+01 : f32
    %201 = vector.broadcast %cst_70 : f32 to vector<8x1xf32>
    %202 = arith.divf %200, %201 : vector<8x1xf32>
    %cst_71 = arith.constant 9.99999974E-6 : f32
    %203 = vector.broadcast %cst_71 : f32 to vector<8x1xf32>
    %204 = arith.addf %202, %203 : vector<8x1xf32>
    %205 = math.rsqrt %204 : vector<8x1xf32>
    %206 = vector.broadcast %205 : vector<8x1xf32> to vector<8x32xf32>
    %207 = arith.mulf %197, %206 : vector<8x32xf32>
    %208 = vector.broadcast %190 : vector<1x32xf32> to vector<8x32xf32>
    %209 = arith.mulf %207, %208 : vector<8x32xf32>
    %210 = vector.broadcast %191 : vector<1x32xf32> to vector<8x32xf32>
    %211 = arith.addf %209, %210 : vector<8x32xf32>
    %212 = arith.truncf %211 : vector<8x32xf32> to vector<8x32xbf16>
    %c0_72 = arith.constant 0 : index
    %c0_73 = arith.constant 0 : index
    %213 = vector.load %arg11[%c0_72, %c0_73] : memref<32x128xbf16, #tpu.memory_space<vmem>>, vector<32x128xbf16>
    %cst_74 = arith.constant dense<0.000000e+00> : vector<8x128xf32>
    %214 = tpu.matmul %212, %213, %cst_74 {dimension_numbers = #tpu.dot_dimension_numbers<[1], [0], [0], [1], [0, 0, 1, 1], [], []>} : vector<8x32xbf16>, vector<32x128xbf16>, vector<8x128xf32> -> vector<8x128xf32>
    %c0_75 = arith.constant 0 : index
    %c0_76 = arith.constant 0 : index
    %215 = vector.load %arg12[%c0_75, %c0_76] : memref<1x128xf32, #tpu.memory_space<vmem>>, vector<1x128xf32>
    %216 = vector.broadcast %215 : vector<1x128xf32> to vector<8x128xf32>
    %217 = arith.addf %214, %216 : vector<8x128xf32>
    %cst_77 = arith.constant 5.000000e-01 : f32
    %218 = vector.broadcast %cst_77 : f32 to vector<8x128xf32>
    %219 = arith.mulf %218, %217 : vector<8x128xf32>
    %cst_78 = arith.constant 0.707106769 : f32
    %220 = vector.broadcast %cst_78 : f32 to vector<8x128xf32>
    %221 = arith.mulf %217, %220 : vector<8x128xf32>
    %cst_79 = arith.constant 0.000000e+00 : f32
    %222 = vector.broadcast %cst_79 : f32 to vector<8x128xf32>
    %223 = arith.cmpf oge, %221, %222 : vector<8x128xf32>
    %cst_80 = arith.constant 1.000000e+00 : f32
    %cst_81 = arith.constant -1.000000e+00 : f32
    %224 = vector.broadcast %cst_80 : f32 to vector<8x128xf32>
    %225 = vector.broadcast %cst_81 : f32 to vector<8x128xf32>
    %226 = arith.select %223, %224, %225 : vector<8x128xi1>, vector<8x128xf32>
    %227 = math.absf %221 : vector<8x128xf32>
    %cst_82 = arith.constant 0.327591091 : f32
    %228 = vector.broadcast %cst_82 : f32 to vector<8x128xf32>
    %229 = arith.mulf %228, %227 : vector<8x128xf32>
    %cst_83 = arith.constant 1.000000e+00 : f32
    %230 = vector.broadcast %cst_83 : f32 to vector<8x128xf32>
    %231 = arith.addf %230, %229 : vector<8x128xf32>
    %232 = tpu.reciprocal %231 {approx = true} : vector<8x128xf32> -> vector<8x128xf32>
    %cst_84 = arith.constant 1.06140542 : f32
    %233 = vector.broadcast %cst_84 : f32 to vector<8x128xf32>
    %234 = arith.mulf %233, %232 : vector<8x128xf32>
    %cst_85 = arith.constant -1.45315206 : f32
    %235 = vector.broadcast %cst_85 : f32 to vector<8x128xf32>
    %236 = arith.addf %234, %235 : vector<8x128xf32>
    %237 = arith.mulf %236, %232 : vector<8x128xf32>
    %cst_86 = arith.constant 1.42141378 : f32
    %238 = vector.broadcast %cst_86 : f32 to vector<8x128xf32>
    %239 = arith.addf %237, %238 : vector<8x128xf32>
    %240 = arith.mulf %239, %232 : vector<8x128xf32>
    %cst_87 = arith.constant -0.284496725 : f32
    %241 = vector.broadcast %cst_87 : f32 to vector<8x128xf32>
    %242 = arith.addf %240, %241 : vector<8x128xf32>
    %243 = arith.mulf %242, %232 : vector<8x128xf32>
    %cst_88 = arith.constant 0.254829586 : f32
    %244 = vector.broadcast %cst_88 : f32 to vector<8x128xf32>
    %245 = arith.addf %243, %244 : vector<8x128xf32>
    %246 = arith.mulf %245, %232 : vector<8x128xf32>
    %cst_89 = arith.constant 0.000000e+00 : f32
    %247 = vector.broadcast %cst_89 : f32 to vector<8x128xf32>
    %248 = arith.subf %247, %227 : vector<8x128xf32>
    %249 = arith.mulf %248, %227 : vector<8x128xf32>
    %250 = math.exp %249 : vector<8x128xf32>
    %251 = arith.mulf %246, %250 : vector<8x128xf32>
    %cst_90 = arith.constant 1.000000e+00 : f32
    %252 = vector.broadcast %cst_90 : f32 to vector<8x128xf32>
    %253 = arith.subf %252, %251 : vector<8x128xf32>
    %254 = arith.mulf %226, %253 : vector<8x128xf32>
    %cst_91 = arith.constant 1.000000e+00 : f32
    %255 = vector.broadcast %cst_91 : f32 to vector<8x128xf32>
    %256 = arith.addf %255, %254 : vector<8x128xf32>
    %257 = arith.mulf %219, %256 : vector<8x128xf32>
    %258 = arith.truncf %257 : vector<8x128xf32> to vector<8x128xbf16>
    %c0_92 = arith.constant 0 : index
    %c0_93 = arith.constant 0 : index
    %259 = vector.load %arg13[%c0_92, %c0_93] : memref<128x32xbf16, #tpu.memory_space<vmem>>, vector<128x32xbf16>
    %cst_94 = arith.constant dense<0.000000e+00> : vector<8x32xf32>
    %260 = tpu.matmul %258, %259, %cst_94 {dimension_numbers = #tpu.dot_dimension_numbers<[1], [0], [0], [1], [0, 0, 1, 1], [], []>} : vector<8x128xbf16>, vector<128x32xbf16>, vector<8x32xf32> -> vector<8x32xf32>
    %c0_95 = arith.constant 0 : index
    %c0_96 = arith.constant 0 : index
    %261 = vector.load %arg14[%c0_95, %c0_96] : memref<1x32xf32, #tpu.memory_space<vmem>>, vector<1x32xf32>
    %262 = vector.broadcast %261 : vector<1x32xf32> to vector<8x32xf32>
    %263 = arith.addf %260, %262 : vector<8x32xf32>
    %264 = arith.addf %189, %263 : vector<8x32xf32>
    %265 = vector.shape_cast %264 : vector<8x32xf32> to vector<1x8x32xf32>
    %c0_97 = arith.constant 0 : index
    %c0_98 = arith.constant 0 : index
    %c0_99 = arith.constant 0 : index
    %266 = vector.load %arg15[%c0_97, %c0_98, %c0_99] : memref<1x8x32xf32, #tpu.memory_space<vmem>>, vector<1x8x32xf32>
    tpu.vector_store %arg15[%c0_97, %c0_98, %c0_99], %265 {strides = array<i32>} : memref<1x8x32xf32, #tpu.memory_space<vmem>>, vector<1x8x32xf32>,
    return
  }
  func.func @transform_0(%arg0: i32) -> (i32, i32, i32) {
    %c0_i32 = arith.constant 0 : i32
    %c0_i32_0 = arith.constant 0 : i32
    %c0_i32_1 = arith.constant 0 : i32
    return %arg0, %c0_i32, %c0_i32_0 : i32, i32, i32
  }
  func.func @transform_1(%arg0: i32) -> (i32, i32) {
    %c0_i32 = arith.constant 0 : i32
    %c0_i32_0 = arith.constant 0 : i32
    %c0_i32_1 = arith.constant 0 : i32
    return %c0_i32, %c0_i32_0 : i32, i32
  }
  func.func @transform_2(%arg0: i32) -> (i32, i32) {
    %c0_i32 = arith.constant 0 : i32
    %c0_i32_0 = arith.constant 0 : i32
    %c0_i32_1 = arith.constant 0 : i32
    return %c0_i32, %c0_i32_0 : i32, i32
  }
  func.func @transform_3(%arg0: i32) -> (i32, i32) {
    %c0_i32 = arith.constant 0 : i32
    %c0_i32_0 = arith.constant 0 : i32
    %c0_i32_1 = arith.constant 0 : i32
    return %c0_i32, %c0_i32_0 : i32, i32
  }
  func.func @transform_4(%arg0: i32) -> (i32, i32) {
    %c0_i32 = arith.constant 0 : i32
    %c0_i32_0 = arith.constant 0 : i32
    %c0_i32_1 = arith.constant 0 : i32
    return %c0_i32, %c0_i32_0 : i32, i32
  }
  func.func @transform_5(%arg0: i32) -> (i32, i32) {
    %c0_i32 = arith.constant 0 : i32
    %c0_i32_0 = arith.constant 0 : i32
    %c0_i32_1 = arith.constant 0 : i32
    return %c0_i32, %c0_i32_0 : i32, i32
  }
  func.func @transform_6(%arg0: i32) -> (i32, i32) {
    %c0_i32 = arith.constant 0 : i32
    %c0_i32_0 = arith.constant 0 : i32
    %c0_i32_1 = arith.constant 0 : i32
    return %c0_i32, %c0_i32_0 : i32, i32
  }
  func.func @transform_7(%arg0: i32) -> (i32, i32) {
    %c0_i32 = arith.constant 0 : i32
    %c0_i32_0 = arith.constant 0 : i32
    %c0_i32_1 = arith.constant 0 : i32
    return %c0_i32, %c0_i32_0 : i32, i32
  }
  func.func @transform_8(%arg0: i32) -> (i32, i32) {
    %c0_i32 = arith.constant 0 : i32
    %c0_i32_0 = arith.constant 0 : i32
    %c0_i32_1 = arith.constant 0 : i32
    return %c0_i32, %c0_i32_0 : i32, i32
  }
  func.func @transform_9(%arg0: i32) -> (i32, i32) {
    %c0_i32 = arith.constant 0 : i32
    %c0_i32_0 = arith.constant 0 : i32
    %c0_i32_1 = arith.constant 0 : i32
    return %c0_i32, %c0_i32_0 : i32, i32
  }
  func.func @transform_10(%arg0: i32) -> (i32, i32) {
    %c0_i32 = arith.constant 0 : i32
    %c0_i32_0 = arith.constant 0 : i32
    %c0_i32_1 = arith.constant 0 : i32
    return %c0_i32, %c0_i32_0 : i32, i32
  }
  func.func @transform_11(%arg0: i32) -> (i32, i32) {
    %c0_i32 = arith.constant 0 : i32
    %c0_i32_0 = arith.constant 0 : i32
    %c0_i32_1 = arith.constant 0 : i32
    return %c0_i32, %c0_i32_0 : i32, i32
  }
  func.func @transform_12(%arg0: i32) -> (i32, i32) {
    %c0_i32 = arith.constant 0 : i32
    %c0_i32_0 = arith.constant 0 : i32
    %c0_i32_1 = arith.constant 0 : i32
    return %c0_i32, %c0_i32_0 : i32, i32
  }
  func.func @transform_13(%arg0: i32) -> (i32, i32) {
    %c0_i32 = arith.constant 0 : i32
    %c0_i32_0 = arith.constant 0 : i32
    %c0_i32_1 = arith.constant 0 : i32
    return %c0_i32, %c0_i32_0 : i32, i32
  }
  func.func @transform_14(%arg0: i32) -> (i32, i32, i32) {
    %c0_i32 = arith.constant 0 : i32
    %c0_i32_0 = arith.constant 0 : i32
    %c0_i32_1 = arith.constant 0 : i32
    return %arg0, %c0_i32, %c0_i32_0 : i32, i32, i32
  }
}

</mosaic_0001>

<bundles_post_ra>
// kernel: tpu_custom_call.1
= control target key start
LH: loop header
LB: loop body
LE: loop exit
PB: predicated region body
PF: predicated region fallthrough
CT: control target
= control target key end

     0   :  { %s2666_s0 = inlined_call_operand.vmem [shape: f32[2,8,32], index: 0, kind: input, shape index: {}]   ;;  %s2667_s1 = inlined_call_operand.vmem [shape: f32[1,32], index: 1, kind: input, shape index: {}]   ;;  %s2668_s2 = inlined_call_operand.vmem [shape: f32[1,32], index: 2, kind: input, shape index: {}]   ;;  %s2669_s3 = inlined_call_operand.vmem [shape: bf16[32,96], index: 3, kind: input, shape index: {}]   ;;  %s2670_s4 = inlined_call_operand.vmem [shape: f32[1,96], index: 4, kind: input, shape index: {}]   ;;  %s2671_s5 = inlined_call_operand.vmem [shape: bf16[8,8], index: 5, kind: input, shape index: {}]   ;;  %s2672_s6 = inlined_call_operand.vmem [shape: bf16[32,32], index: 6, kind: input, shape index: {}]   ;;  %s2673_s7 = inlined_call_operand.vmem [shape: f32[1,32], index: 7, kind: input, shape index: {}]   ;;  %s2674_s8 = inlined_call_operand.vmem [shape: f32[1,32], index: 8, kind: input, shape index: {}]   ;;  %s2675_s9 = inlined_call_operand.vmem [shape: f32[1,32], index: 9, kind: input, shape index: {}]   ;;  %s2676_s10 = inlined_call_operand.vmem [shape: bf16[32,128], index: 10, kind: input, shape index: {}]   ;;  %s2677_s11 = inlined_call_operand.vmem [shape: f32[1,128], index: 11, kind: input, shape index: {}]   ;;  %s2678_s12 = inlined_call_operand.vmem [shape: bf16[128,32], index: 12, kind: input, shape index: {}]   ;;  %s2679_s13 = inlined_call_operand.vmem [shape: f32[1,32], index: 13, kind: input, shape index: {}]   ;;  %s2680_s14 = inlined_call_operand.hbm [shape: f32[2,8,32], index: 14, kind: output, shape index: {}]  }
   0x1   :  { %2687 = sst [smem:[#allocation5_spill]] %s2666_s0 }
   0x2   :  { %2688 = sst [smem:[#allocation6_spill]] %s2667_s1 }
   0x3   :  { %2689 = sst [smem:[#allocation7_spill]] %s2668_s2 }
   0x4   :  { %2690 = sst [smem:[#allocation8_spill]] %s2669_s3 }
   0x5   :  { %19 = vsyncpa [#allocation3], 0 }
   0x6   :  { %21 = vsyncpa [#allocation3 + $0x1], 0  ;;  %s2222_s29 = smov 0   ;;  %s2224_s30 = smov 0  }
   0x7   :  { %s2226_s15 = smov 0   ;;  %s2228_s16 = smov 0  }
   0x8 LB: > { %s2243_s17 = sadd.s32 4294967295, %s2122_s16   ;;  %s1756_s18 = sadd.s32 4294967294, %s2122_s16   ;;  %s2122_s16 = sphi %s2228_s16, %s2709_s16   ;;  %s2118_s15 = sphi %s2226_s15, %s2708_s15   ;;  %s2114_s30 = sphi %s2224_s30, %s2707_s30   ;;  %s2110_s29 = sphi %s2222_s29, %s2706_s29  }
   0x9   : > { %s2247_s19 = sadd.s32 1, %s2122_s16   ;;  %s333_s20 = sadd.s32 1, %s2118_s15 }
   0xa   : > { %s330_s21 = ssub.s32 %s2122_s16, %s2247_s19  ;;  %p343_p0 = scmp.ne.s32.totalorder %s2118_s15, %s2114_s30 }
   0xb   : > { %p331_p1 = scmp.eq.s32.totalorder %s330_s21, 0  ;;  %p344_p2 = scmp.eq.s32.totalorder %s2243_s17, 1 }
   0xc   : > { %p349_p3 = scmp.ne.s32.totalorder %s2114_s30, %s2110_s29  ;;  %p350_p4 = scmp.eq.s32.totalorder %s1756_s18, 1 }
   0xd   : > { %s2258_s22 = scalar_select %p331_p1, %s2118_s15, %s333_s20  }
   0xe   : > { %p2260_p5 = por %p344_p2, %p343_p0  ;;  %p2264_p6 = por %p350_p4, %p349_p3 }
   0xf   : > { %p1759_p7 = scmp.ge.s32.totalorder %s2122_s16, 1  ;;  %p414_p8 = scmp.lt.s32.totalorder %s2122_s16, 3 }
  0x11   : > { %p415_p9 = pnand %p1759_p7, %p414_p8 }
  0x12   : > { %p459_p10 = scmp.lt.s32.totalorder (!%p415_p9), %s2243_s17, 1  ;;  %vm467_vm0 = vcmask (!%p415_p9), 261120   ;;  %s2693_s0 = sld [smem:[#allocation5_spill]] (!%p415_p9)  ;;  %v2124_v8 = vmov (!%p415_p9), 0.0   ;;  %vm2125_vm1 = vmmov (!%p415_p9), 0   ;;  %vm581_vm2 = vcmask (!%p415_p9), 1043456  }
  0x13   : > { %418 = sbr.rel (%p415_p9) target bundleno = 5980 (0x175c), region = 76  ;;  %s2694_s3 = sld [smem:[#allocation8_spill]] (!%p415_p9)  ;;  %1845 = vmatprep.subr.bf16.mxu1 (!%p415_p9), %v2124_v8  ;;  %1849 = vmatprep.mubr.msk.bf16.mxu1 (!%p415_p9), %vm2125_vm1, %v2124_v8  ;;  %v564_v18 = vld [vmem:[%s2671_s5] sm:$0xf] (!%p415_p9)  ;;  %vm577_vm3 = vcmask (!%p415_p9), 64512   ;;  %vm625_vm4 = vcmask (!%p415_p9), 1047616   ;;  %v565_v35 = vlaneseq (!%p415_p9) }
  0x14   : > { %1865 = vmatprep.subr.bf16.mxu0 (!%p415_p9), %v2124_v8  ;;  %1867 = vmatprep.mubr.msk.bf16.mxu0 (!%p415_p9), %vm2125_vm1, %v2124_v8  ;;  %s2695_s1 = sld [smem:[#allocation6_spill]] (!%p415_p9)  ;;  %s2696_s2 = sld [smem:[#allocation7_spill]] (!%p415_p9)  ;;  %v2305_v21 = vsel (!%p415_p9), %vm581_vm2, %v564_v18, 0  ;;  %v1764_v22 = vld [vmem:[%s2670_s4] ss:$0 sm:$0xff] (!%p415_p9)  ;;  %vm1375_vm9 = vcmask (!%p415_p9), 130048  }
  0x15   : > { %s2126_s28 = smov (!%p415_p9), 1   ;;  %s2128_s20 = smov (!%p415_p9), 96   ;;  %v2327_v36 = vshrl.u32 (!%p415_p9), %v565_v35, 7  ;;  %vm1377_vm10 = vcmask (!%p415_p9), 195584  }
  0x16   : > { %s2681_s21 = smov (!%p415_p9), 127   ;;  %s2685_s27 = smov (!%p415_p9), 2  }
  0x17   : > { %v570_v37 = vsub.s32 (!%p415_p9), 7, %v2327_v36 }
  0x19   : > { %v2022_v7 = vld [vmem:[%s2694_s3] sm:$0xff] (!%p415_p9)   ;;  %v2023_v9 = vld [vmem:[%s2694_s3 + $0x8] sm:$0xff] (!%p415_p9)   ;;  %v571_v38 = vand.u32 (!%p415_p9), 1, %v570_v37  ;;  %v573_v58 = vand.u32 (!%p415_p9), 2, %v570_v37 }
  0x1a   : > { %s460_s25 = scalar_select %p459_p10, %s2243_s17, 1  ;;  %1846 = vmatpush3.bf16.msra.mxu1 %v2022_v7  ;;  %v1762_v14 = vld [vmem:[%s2695_s1] ss:$0 sm:$0xff] }
  0x1b   : > { %1847 = vmatprep.subr.bf16.mxu1 %v2124_v8  ;;  %v1763_v16 = vld [vmem:[%s2696_s2] ss:$0 sm:$0xff]  ;;  %vm2330_vm5 = vcmp.ne.s32.totalorder %v571_v38, 0  ;;  %vm2357_vm6 = vcmp.ne.s32.totalorder %v573_v58, 0 }
  0x1c   : > { %s1761_s26 = sshll.u32 %s460_s25, 3  ;;  %s2130_s25 = smov 120  }
  0x1d   : > { %s462_s18 = scalar_lea.vmem %s2693_s0, %s1761_s26  ;;  %s2131_s26 = smov 126  }
  0x1e   : > { %v2275_v0 = vld [vmem:[%s462_s18] sm:$0xff]  ;;  %1848 = vmatpush3.bf16.msra.mxu1 %v2023_v9  ;;  %s2127_s18 = smov 8   ;;  %s456_s0 = sand.u32 1, %s2114_s30  }
  0x1f   : > { %v468_v1 = vsel %vm467_vm0, %v2275_v0, 0.0  ;;  %1853 = vmatprep.subr.bf16.mxu1 %v2124_v8 }
  0x20   : > { %469 = vadd.xlane.f32.xlu0 %v468_v1 }
  0xad   : > { %v470_v2 = vpop.xlane.xlu0 %469 }
  0xae   : > { %v472_v3 = vmul.f32 0.03125, %v470_v2 }
  0xb0   : > { %v473_v4 = vsub.f32 %v2275_v0, %v472_v3 }
  0xb2   : > { %v474_v5 = vmul.f32 %v473_v4, %v473_v4 }
  0xb4   : > { %v475_v6 = vsel %vm467_vm0, %v474_v5, 0.0 }
  0xb5   : > { %476 = vadd.xlane.f32.xlu0 %v475_v6  ;;  %v575_v6 = vand.u32 4, %v570_v37 }
  0xb7   : > { %vm2373_vm7 = vcmp.ne.s32.totalorder %v575_v6, 0 }
 0x142   : > { %v477_v10 = vpop.xlane.xlu0 %476 }
 0x143   : > { %v478_v11 = vmul.f32 0.03125, %v477_v10 }
 0x145   : > { %v479_v12 = vadd.f32 1e-05, %v478_v11 }
 0x147   : > { %2036 = vrsqrt.f32 %v479_v12 }
 0x151   : > { %v2037_v13 = vpop.eup %2036 }
 0x152   : > { %v481_v15 = vmul.f32 %v2037_v13, %v473_v4 }
 0x154   : > { %v488_v17 = vmul.f32 %v1762_v14, %v481_v15 }
 0x156   : > { %v495_v19 = vadd.f32 %v1763_v16, %v488_v17  ;;  %v2386_v17 = vand.u32 127, %v565_v35 }
 0x158   : > { %v496_v20 = vpack.c.bf16 %v495_v19, %v495_v19  ;;  %vm569_vm8 = vcmp.le.s32.totalorder %v2386_v17, %v2327_v36 }
 0x15a   : > { %1850 = vmatmul.mubr.msk.bf16.vlgmr.msra.gmra.mrb[0].mxu1 %vm467_vm0, %v496_v20 }
 0x15b   : > { %1854 = vmatpush3.bf16.msra.mxu1 %v2305_v21  ;;  %1855 = vmatprep.mubr.msk.bf16.mxu1 %vm2125_vm1, %v2124_v8 }
 0x15c   : > { %1859 = vmatprep.subr.bf16.mxu1 %v2124_v8 }
 0x22d   : > { %v557_v23 = vpop.f32.mrb[0].mxu1 }
 0x22e   : > { %v558_v24 = vadd.f32 %v1764_v22, %v557_v23  ;;  %v1851_v25 = vpop.f32.mrb[1].mxu1 }
 0x22f   : > { %v560_v26 = vpop.f32.mrb[2].mxu1 }
 0x230   : > { %v2315_v27 = vpack.c.bf16 %v558_v24, %v558_v24  ;;  %v1852_v28 = vpop.f32.mrb[3].mxu1 }
 0x232   : > { %1856 = vmatmul.mubr.msk.bf16.vlgmr.msra.gmra.mrb[4].mxu1 %vm577_vm3, %v2315_v27 }
 0x233   : > { %1861 = vmatprep.mubr.msk.bf16.mxu1 %vm2125_vm1, %v2124_v8 }
 0x305   : > { %v619_v29 = vpop.f32.mrb[4].mxu1 }
 0x306   : > { %633 = vrot.lane.b32.xlu0 %v619_v29, %s2126_s28  ;;  %626 = vrot.lane.b32.xlu1 %v619_v29, %s2127_s18  ;;  %v1857_v30 = vpop.f32.mrb[5].mxu1 }
 0x307   : > { %v622_v31 = vpop.f32.mrb[6].mxu1 }
 0x308   : > { %v1858_v32 = vpop.f32.mrb[7].mxu1 }
 0x378   : > { %v627_v33 = vpop.permute.xlu1 %626  ;;  %v634_v41 = vpop.permute.xlu0 %633 }
 0x379   : > { %v628_v34 = vsel %vm625_vm4, %v627_v33, %v619_v29 }
 0x37a   : > { %629 = vrot.lane.b32.xlu1 %v628_v34, %s2127_s18 }
 0x37e   : > { %666 = vrot.lane.b32.xlu1 %v2315_v27, %s2128_s20  ;;  %s2683_s20 = smov 124  }
 0x3ec   : > { %v630_v40 = vpop.permute.xlu1 %629 }
 0x3ed   : > { %v631_v42 = vsel %vm625_vm4, %v630_v40, %v619_v29 }
 0x3ee   : > { %v636_v43 = vsel %vm2330_vm5, %v631_v42, %v634_v41 }
 0x3ef   : > { %638 = vrot.lane.b32.xlu1 %v636_v43, %s2681_s21 }
 0x3f0   : > { %v667_v44 = vpop.permute.xlu1 %666 }
 0x3f1   : > { %v673_v45 = vsel %vm577_vm3, %v667_v44, 0 }
 0x3f2   : > { %1860 = vmatpush3.bf16.xpose.msra.mxu1 %v673_v45 }
 0x3f3   : > { %777 = vrot.lane.b32.xlu1 %v2315_v27, %s2130_s25  ;;  %1871 = vmatprep.subr.bf16.mxu1 %v2124_v8  ;;  %s2134_s25 = smov 64  }
 0x3f9   : > { %1862 = vmatmul.mubr.msk.bf16.vlgmr.msra.gmra.mrb[8].mxu1 %vm577_vm3, %v2315_v27 }
 0x3fa   : > { %1872 = vmatpush3.bf16.msra.mxu1 %v2305_v21  ;;  %1873 = vmatprep.mubr.msk.bf16.mxu1 %vm2125_vm1, %v2124_v8 }
 0x3fb   : > { %1883 = vmatprep.subr.bf16.mxu1 %v2124_v8 }
 0x461   : > { %v639_v46 = vpop.permute.xlu1 %638 }
 0x462   : > { %641 = vrot.lane.b32.xlu1 %v639_v46, %s2127_s18 }
 0x465   : > { %v2348_v47 = vpop.permute.xlu1 %777 }
 0x466   : > { %1874 = vmatmul.mubr.msk.bf16.vlgmr.msra.gmra.mrb[12].mxu1 %vm577_vm3, %v2348_v47 }
 0x467   : > { %1885 = vmatprep.mubr.msk.bf16.mxu1 %vm2125_vm1, %v2124_v8 }
 0x4cc   : > { %v709_v48 = vpop.f32.mrb[8].mxu1 }
 0x4cd   : > { %v1863_v49 = vpop.f32.mrb[9].mxu1 }
 0x4ce   : > { %v712_v50 = vpop.f32.mrb[10].mxu1 }
 0x4cf   : > { %v1864_v51 = vpop.f32.mrb[11].mxu1 }
 0x4d4   : > { %v642_v52 = vpop.permute.xlu1 %641 }
 0x4d5   : > { %v643_v53 = vsel %vm625_vm4, %v642_v52, %v639_v46 }
 0x4d6   : > { %644 = vrot.lane.b32.xlu1 %v643_v53, %s2127_s18 }
 0x4da   : > { %647 = vrot.lane.b32.xlu1 %v636_v43, %s2126_s28 }
 0x539   : > { %v816_v54 = vpop.f32.mrb[12].mxu1 }
 0x53a   : > { %v1875_v55 = vpop.f32.mrb[13].mxu1 }
 0x53b   : > { %v819_v56 = vpop.f32.mrb[14].mxu1 }
 0x53c   : > { %v1876_v57 = vpop.f32.mrb[15].mxu1 }
 0x548   : > { %v645_v59 = vpop.permute.xlu1 %644 }
 0x549   : > { %v646_v61 = vsel %vm625_vm4, %v645_v59, %v639_v46 }
 0x54c   : > { %v648_v62 = vpop.permute.xlu1 %647 }
 0x54d   : > { %v650_v63 = vsel %vm2357_vm6, %v646_v61, %v648_v62 }
 0x54e   : > { %652 = vrot.lane.b32.xlu0 %v650_v63, %s2131_s26 }
 0x552   : > { %822 = vrot.lane.b32.xlu0 %v816_v54, %s2127_s18 }
 0x556   : > { %661 = vrot.lane.b32.xlu0 %v650_v63, %s2685_s27 }
 0x55a   : > { %829 = vrot.lane.b32.xlu0 %v816_v54, %s2126_s28 }
 0x5c0   : > { %v653_v1 = vpop.permute.xlu0 %652 }
 0x5c1   : > { %655 = vrot.lane.b32.xlu1 %v653_v1, %s2127_s18 }
 0x5c4   : > { %v823_v4 = vpop.permute.xlu0 %822 }
 0x5c5   : > { %v824_v5 = vsel %vm625_vm4, %v823_v4, %v816_v54 }
 0x5c8   : > { %v662_v7 = vpop.permute.xlu0 %661 }
 0x5cc   : > { %v830_v14 = vpop.permute.xlu0 %829 }
 0x633   : > { %v656_v2 = vpop.permute.xlu1 %655 }
 0x634   : > { %v657_v3 = vsel %vm625_vm4, %v656_v2, %v653_v1 }
 0x635   : > { %658 = vrot.lane.b32.xlu1 %v657_v3, %s2127_s18 }
 0x639   : > { %825 = vrot.lane.b32.xlu1 %v824_v5, %s2127_s18 }
 0x6a7   : > { %v659_v10 = vpop.permute.xlu1 %658 }
 0x6a8   : > { %v660_v11 = vsel %vm625_vm4, %v659_v10, %v653_v1 }
 0x6a9   : > { %v664_v12 = vsel %vm2373_vm7, %v660_v11, %v662_v7 }
 0x6aa   : > { %669 = vrot.lane.b32.xlu1 %v664_v12, %s2683_s20  ;;  %s2136_s20 = smov 112  }
 0x6ab   : > { %v826_v13 = vpop.permute.xlu1 %825 }
 0x6ac   : > { %v827_v15 = vsel %vm625_vm4, %v826_v13, %v816_v54 }
 0x6ad   : > { %v832_v16 = vsel %vm2330_vm5, %v827_v15, %v830_v14 }
 0x6ae   : > { %834 = vrot.lane.b32.xlu0 %v832_v16, %s2681_s21  ;;  %s2135_s21 = smov 88  }
 0x71c   : > { %v670_v18 = vpop.permute.xlu1 %669 }
 0x71d   : > { %v710_v19 = vadd.f32 %v709_v48, %v670_v18 }
 0x71f   : > { %v715_v20 = vmul.f32 0.35355338, %v710_v19 }
 0x720   : > { %v835_v22 = vpop.permute.xlu0 %834 }
 0x721   : > { %837 = vrot.lane.b32.xlu0 %v835_v22, %s2127_s18  ;;  %v716_v23 = vsel %vm569_vm8, %v715_v20, -1e+30 }
 0x722   : > { %v717_v24 = vsel %vm577_vm3, %v716_v23, -inf }
 0x723   : > { %718 = vmax.xlane.f32.xlu1 %v717_v24 }
 0x793   : > { %v838_v25 = vpop.permute.xlu0 %837 }
 0x794   : > { %v839_v26 = vsel %vm625_vm4, %v838_v25, %v835_v22 }
 0x795   : > { %840 = vrot.lane.b32.xlu1 %v839_v26, %s2127_s18 }
 0x799   : > { %729 = vrot.lane.b32.xlu1 %v2315_v27, %s2134_s25  ;;  %s2704_s25 = smov 127  }
 0x79d   : > { %861 = vrot.lane.b32.xlu1 %v2315_v27, %s2135_s21  ;;  %s2703_s21 = smov 124  }
 0x7b0   : > { %v719_v28 = vpop.xlane.xlu1 %718 }
 0x7b1   : > { %v720_v29 = vsub.f32 %v716_v23, %v719_v28 }
 0x7b3   : > { %v721_v30 = vmul.f32 1.442695, %v720_v29 }
 0x7b5   : > { %2038 = vpow2.f32 %v721_v30 }
 0x7bf   : > { %v2039_v31 = vpop.eup %2038 }
 0x7c0   : > { %v723_v32 = vsel %vm577_vm3, %v2039_v31, 0.0 }
 0x7c1   : > { %724 = vadd.xlane.f32.xlu0 %v723_v32 }
 0x7d7   : > { %843 = vrot.lane.b32.xlu0 %v832_v16, %s2126_s28 }
 0x7db   : > { %972 = vrot.lane.b32.xlu0 %v2315_v27, %s2136_s20  ;;  %s2137_s20 = smov 56  }
 0x807   : > { %v841_v33 = vpop.permute.xlu1 %840 }
 0x808   : > { %v842_v38 = vsel %vm625_vm4, %v841_v33, %v835_v22 }
 0x80b   : > { %v730_v34 = vpop.permute.xlu1 %729 }
 0x80c   : > { %v735_v35 = vsel %vm581_vm2, %v730_v34, 0 }
 0x80d   : > { %1866 = vmatpush3.bf16.msra.mxu0 %v735_v35 }
 0x80e   : > { %1877 = vmatprep.subr.bf16.mxu0 %v2124_v8 }
 0x80f   : > { %v862_v44 = vpop.permute.xlu1 %861 }
 0x810   : > { %v868_v46 = vsel %vm577_vm3, %v862_v44, 0 }
 0x84e   : > { %v725_v37 = vpop.xlane.xlu0 %724 }
 0x84f   : > { %2040 = vrcp.f32 %v725_v37 }
 0x852   : > { %v844_v40 = vpop.permute.xlu0 %843 }
 0x853   : > { %v846_v41 = vsel %vm2357_vm6, %v842_v38, %v844_v40 }
 0x854   : > { %848 = vrot.lane.b32.xlu1 %v846_v41, %s2131_s26 }
 0x856   : > { %v2419_v48 = vpop.permute.xlu0 %972 }
 0x859   : > { %v2041_v42 = vpop.eup %2040 }
 0x85a   : > { %v727_v43 = vmul.f32 %v2041_v42, %v2039_v31 }
 0x85c   : > { %v728_v45 = vpack.c.bf16 %v727_v43, %v727_v43 }
 0x85e   : > { %1868 = vmatmul.mubr.msk.bf16.vlgmr.msra.gmra.mrb[0].mxu0 %vm577_vm3, %v728_v45 }
 0x85f   : > { %1878 = vmatpush3.bf16.xpose.msra.mxu0 %v868_v46  ;;  %1879 = vmatprep.mubr.msk.bf16.mxu0 %vm2125_vm1, %v2124_v8 }
 0x860   : > { %1889 = vmatprep.subr.bf16.mxu0 %v2124_v8 }
 0x866   : > { %1880 = vmatmul.mubr.msk.bf16.vlgmr.msra.gmra.mrb[4].mxu0 %vm577_vm3, %v2348_v47 }
 0x867   : > { %1890 = vmatpush3.bf16.msra.mxu0 %v2305_v21  ;;  %1891 = vmatprep.mubr.msk.bf16.mxu0 %vm2125_vm1, %v2124_v8 }
 0x868   : > { %1901 = vmatprep.subr.bf16.mxu0 %v2124_v8 }
 0x86e   : > { %1892 = vmatmul.mubr.msk.bf16.vlgmr.msra.gmra.mrb[8].mxu0 %vm577_vm3, %v2419_v48 }
 0x86f   : > { %1903 = vmatprep.mubr.msk.bf16.mxu0 %vm2125_vm1, %v2124_v8 }
 0x8c6   : > { %v849_v49 = vpop.permute.xlu1 %848 }
 0x8c7   : > { %851 = vrot.lane.b32.xlu0 %v849_v49, %s2127_s18 }
 0x8cb   : > { %857 = vrot.lane.b32.xlu0 %v846_v41, %s2685_s27  ;;  %s2138_s27 = smov 104  }
 0x931   : > { %v2427_v47 = vpop.f32.mrb[0].mxu0 }
 0x932   : > { %v1869_v50 = vpop.f32.mrb[1].mxu0 }
 0x933   : > { %v774_v51 = vpop.f32.mrb[2].mxu0 }
 0x934   : > { %v1870_v52 = vpop.f32.mrb[3].mxu0 }
 0x939   : > { %v904_v53 = vpop.f32.mrb[4].mxu0  ;;  %v852_v54 = vpop.permute.xlu0 %851 }
 0x93a   : > { %v1881_v55 = vpop.f32.mrb[5].mxu0  ;;  %v853_v56 = vsel %vm625_vm4, %v852_v54, %v849_v49 }
 0x93b   : > { %v907_v57 = vpop.f32.mrb[6].mxu0  ;;  %854 = vrot.lane.b32.xlu1 %v853_v56, %s2127_s18 }
 0x93c   : > { %v1882_v58 = vpop.f32.mrb[7].mxu0 }
 0x93d   : > { %v858_v2 = vpop.permute.xlu0 %857 }
 0x941   : > { %v1011_v59 = vpop.f32.mrb[8].mxu0 }
 0x942   : > { %v1893_v61 = vpop.f32.mrb[9].mxu0 }
 0x943   : > { %v1014_v62 = vpop.f32.mrb[10].mxu0 }
 0x944   : > { %v1894_v63 = vpop.f32.mrb[11].mxu0 }
 0x9ad   : > { %v855_v1 = vpop.permute.xlu1 %854 }
 0x9ae   : > { %v856_v3 = vsel %vm625_vm4, %v855_v1, %v849_v49 }
 0x9af   : > { %v860_v4 = vsel %vm2373_vm7, %v856_v3, %v858_v2 }
 0x9b0   : > { %864 = vrot.lane.b32.xlu1 %v860_v4, %s2703_s21 }
 0x9b4   : > { %1017 = vrot.lane.b32.xlu1 %v1011_v59, %s2127_s18 }
 0xa22   : > { %v865_v5 = vpop.permute.xlu1 %864 }
 0xa23   : > { %v905_v6 = vadd.f32 %v904_v53, %v865_v5 }
 0xa25   : > { %v910_v7 = vmul.f32 0.35355338, %v905_v6 }
 0xa26   : > { %v1018_v10 = vpop.permute.xlu1 %1017 }
 0xa27   : > { %v1019_v11 = vsel %vm625_vm4, %v1018_v10, %v1011_v59  ;;  %v911_v12 = vsel %vm569_vm8, %v910_v7, -1e+30 }
 0xa28   : > { %1020 = vrot.lane.b32.xlu1 %v1019_v11, %s2127_s18  ;;  %v912_v13 = vsel %vm577_vm3, %v911_v12, -inf }
 0xa29   : > { %913 = vmax.xlane.f32.xlu0 %v912_v13 }
 0xa2c   : > { %1024 = vrot.lane.b32.xlu1 %v1011_v59, %s2126_s28 }
 0xa3f   : > { %924 = vrot.lane.b32.xlu0 %v2315_v27, %s2137_s20  ;;  %s2139_s20 = smov 80  }
 0xa9a   : > { %v1021_v14 = vpop.permute.xlu1 %1020 }
 0xa9b   : > { %v1022_v15 = vsel %vm625_vm4, %v1021_v14, %v1011_v59 }
 0xa9e   : > { %v1025_v16 = vpop.permute.xlu1 %1024 }
 0xa9f   : > { %v1027_v18 = vsel %vm2330_vm5, %v1022_v15, %v1025_v16 }
 0xaa0   : > { %1029 = vrot.lane.b32.xlu0 %v1027_v18, %s2704_s25 }
 0xaa4   : > { %1167 = vrot.lane.b32.xlu0 %v2315_v27, %s2138_s27  ;;  %s2705_s27 = smov 2  }
 0xab6   : > { %v914_v19 = vpop.xlane.xlu0 %913 }
 0xab7   : > { %v915_v20 = vsub.f32 %v911_v12, %v914_v19 }
 0xab9   : > { %v916_v22 = vmul.f32 1.442695, %v915_v20 }
 0xaba   : > { %v925_v23 = vpop.permute.xlu0 %924 }
 0xabb   : > { %2042 = vpow2.f32 %v916_v22  ;;  %v930_v24 = vsel %vm581_vm2, %v925_v23, 0 }
 0xabc   : > { %1884 = vmatpush3.bf16.msra.mxu1 %v930_v24 }
 0xabd   : > { %1895 = vmatprep.subr.bf16.mxu1 %v2124_v8 }
 0xac5   : > { %v2043_v25 = vpop.eup %2042 }
 0xac6   : > { %v918_v26 = vsel %vm577_vm3, %v2043_v25, 0.0 }
 0xac7   : > { %919 = vadd.xlane.f32.xlu1 %v918_v26 }
 0xad8   : > { %1056 = vrot.lane.b32.xlu1 %v2315_v27, %s2139_s20  ;;  %s2140_s20 = smov 48  }
 0xadc   : > { %1038 = vrot.lane.b32.xlu1 %v1027_v18, %s2126_s28 }
 0xb12   : > { %v1030_v28 = vpop.permute.xlu0 %1029 }
 0xb13   : > { %1032 = vrot.lane.b32.xlu0 %v1030_v28, %s2127_s18 }
 0xb16   : > { %v2466_v35 = vpop.permute.xlu0 %1167 }
 0xb54   : > { %v920_v29 = vpop.xlane.xlu1 %919 }
 0xb55   : > { %2044 = vrcp.f32 %v920_v29 }
 0xb58   : > { %v1057_v32 = vpop.permute.xlu1 %1056 }
 0xb59   : > { %v1063_v34 = vsel %vm577_vm3, %v1057_v32, 0 }
 0xb5f   : > { %v2045_v30 = vpop.eup %2044 }
 0xb60   : > { %v922_v31 = vmul.f32 %v2045_v30, %v2043_v25 }
 0xb62   : > { %v923_v33 = vpack.c.bf16 %v922_v31, %v922_v31 }
 0xb64   : > { %1886 = vmatmul.mubr.msk.bf16.vlgmr.msra.gmra.mrb[16].mxu1 %vm577_vm3, %v923_v33 }
 0xb65   : > { %1896 = vmatpush3.bf16.xpose.msra.mxu1 %v1063_v34  ;;  %1897 = vmatprep.mubr.msk.bf16.mxu1 %vm2125_vm1, %v2124_v8 }
 0xb66   : > { %1907 = vmatprep.subr.bf16.mxu1 %v2124_v8 }
 0xb6c   : > { %1898 = vmatmul.mubr.msk.bf16.vlgmr.msra.gmra.mrb[20].mxu1 %vm577_vm3, %v2419_v48 }
 0xb6d   : > { %1908 = vmatpush3.bf16.msra.mxu1 %v2305_v21  ;;  %1909 = vmatprep.mubr.msk.bf16.mxu1 %vm2125_vm1, %v2124_v8  ;;  %v1039_v21 = vpop.permute.xlu1 %1038 }
 0xb6e   : > { %1919 = vmatprep.subr.bf16.mxu1 %v2124_v8 }
 0xb74   : > { %1910 = vmatmul.mubr.msk.bf16.vlgmr.msra.gmra.mrb[24].mxu1 %vm577_vm3, %v2466_v35 }
 0xb75   : > { %1921 = vmatprep.mubr.msk.bf16.mxu1 %vm2125_vm1, %v2124_v8 }
 0xb85   : > { %v1033_v37 = vpop.permute.xlu0 %1032 }
 0xb86   : > { %v1034_v38 = vsel %vm625_vm4, %v1033_v37, %v1030_v28 }
 0xb87   : > { %1035 = vrot.lane.b32.xlu0 %v1034_v38, %s2127_s18 }
 0xbf9   : > { %v1036_v40 = vpop.permute.xlu0 %1035 }
 0xbfa   : > { %v1037_v41 = vsel %vm625_vm4, %v1036_v40, %v1030_v28 }
 0xbfb   : > { %v1041_v42 = vsel %vm2357_vm6, %v1037_v41, %v1039_v21 }
 0xbfc   : > { %1043 = vrot.lane.b32.xlu0 %v1041_v42, %s2131_s26 }
 0xc37   : > { %v2478_v43 = vpop.f32.mrb[16].mxu1 }
 0xc38   : > { %v1887_v44 = vpop.f32.mrb[17].mxu1 }
 0xc39   : > { %v969_v45 = vpop.f32.mrb[18].mxu1 }
 0xc3a   : > { %v1888_v46 = vpop.f32.mrb[19].mxu1 }
 0xc3f   : > { %v1099_v48 = vpop.f32.mrb[20].mxu1 }
 0xc40   : > { %v1899_v49 = vpop.f32.mrb[21].mxu1 }
 0xc41   : > { %v1102_v50 = vpop.f32.mrb[22].mxu1 }
 0xc42   : > { %v1900_v51 = vpop.f32.mrb[23].mxu1 }
 0xc47   : > { %v1206_v52 = vpop.f32.mrb[24].mxu1 }
 0xc48   : > { %1212 = vrot.lane.b32.xlu0 %v1206_v52, %s2127_s18  ;;  %v1911_v53 = vpop.f32.mrb[25].mxu1 }
 0xc49   : > { %v1209_v54 = vpop.f32.mrb[26].mxu1 }
 0xc4a   : > { %v1912_v55 = vpop.f32.mrb[27].mxu1 }
 0xc4c   : > { %1052 = vrot.lane.b32.xlu0 %v1041_v42, %s2705_s27 }
 0xc50   : > { %1219 = vrot.lane.b32.xlu0 %v1206_v52, %s2126_s28 }
 0xc6e   : > { %v1044_v56 = vpop.permute.xlu0 %1043 }
 0xc6f   : > { %1046 = vrot.lane.b32.xlu1 %v1044_v56, %s2127_s18 }
 0xcba   : > { %v1213_v59 = vpop.permute.xlu0 %1212 }
 0xcbb   : > { %v1214_v61 = vsel %vm625_vm4, %v1213_v59, %v1206_v52 }
 0xcbe   : > { %v1053_v62 = vpop.permute.xlu0 %1052 }
 0xcc2   : > { %v1220_v4 = vpop.permute.xlu0 %1219 }
 0xce1   : > { %v1047_v57 = vpop.permute.xlu1 %1046 }
 0xce2   : > { %v1048_v58 = vsel %vm625_vm4, %v1047_v57, %v1044_v56 }
 0xce3   : > { %1049 = vrot.lane.b32.xlu1 %v1048_v58, %s2127_s18 }
 0xce7   : > { %1215 = vrot.lane.b32.xlu1 %v1214_v61, %s2127_s18 }
 0xd55   : > { %v1050_v63 = vpop.permute.xlu1 %1049 }
 0xd56   : > { %v1051_v1 = vsel %vm625_vm4, %v1050_v63, %v1044_v56 }
 0xd57   : > { %v1055_v2 = vsel %vm2373_vm7, %v1051_v1, %v1053_v62 }
 0xd58   : > { %1059 = vrot.lane.b32.xlu1 %v1055_v2, %s2703_s21 }
 0xd59   : > { %v1216_v3 = vpop.permute.xlu1 %1215 }
 0xd5a   : > { %v1217_v5 = vsel %vm625_vm4, %v1216_v3, %v1206_v52  ;;  %v2025_v3 = vld [vmem:[%s2672_s6 + $0x8] sm:$0xff]  }
 0xd5b   : > { %v1222_v6 = vsel %vm2330_vm5, %v1217_v5, %v1220_v4 }
 0xd5c   : > { %1224 = vrot.lane.b32.xlu0 %v1222_v6, %s2704_s25  ;;  %s2141_s25 = smov 72  }
 0xdca   : > { %v1060_v7 = vpop.permute.xlu1 %1059 }
 0xdcb   : > { %v1100_v10 = vadd.f32 %v1099_v48, %v1060_v7 }
 0xdcd   : > { %v1105_v11 = vmul.f32 0.35355338, %v1100_v10 }
 0xdce   : > { %v1225_v12 = vpop.permute.xlu0 %1224 }
 0xdcf   : > { %1227 = vrot.lane.b32.xlu0 %v1225_v12, %s2127_s18  ;;  %v1106_v13 = vsel %vm569_vm8, %v1105_v11, -1e+30 }
 0xdd0   : > { %v1107_v14 = vsel %vm577_vm3, %v1106_v13, -inf }
 0xdd1   : > { %1108 = vmax.xlane.f32.xlu1 %v1107_v14 }
 0xe41   : > { %v1228_v15 = vpop.permute.xlu0 %1227 }
 0xe42   : > { %v1229_v16 = vsel %vm625_vm4, %v1228_v15, %v1225_v12 }
 0xe43   : > { %1230 = vrot.lane.b32.xlu1 %v1229_v16, %s2127_s18 }
 0xe47   : > { %1119 = vrot.lane.b32.xlu1 %v2315_v27, %s2140_s20 }
 0xe4b   : > { %1251 = vrot.lane.b32.xlu1 %v2315_v27, %s2141_s25  ;;  %s2144_s25 = smov 24  }
 0xe5e   : > { %v1109_v39 = vpop.xlane.xlu1 %1108 }
 0xe5f   : > { %v1110_v18 = vsub.f32 %v1106_v13, %v1109_v39  ;;  %v1780_v39 = vld [vmem:[%s2673_s7] ss:$0 sm:$0xff] }
 0xe61   : > { %v1111_v19 = vmul.f32 1.442695, %v1110_v18 }
 0xe63   : > { %2046 = vpow2.f32 %v1111_v19 }
 0xe6d   : > { %v2047_v20 = vpop.eup %2046 }
 0xe6e   : > { %v1113_v22 = vsel %vm577_vm3, %v2047_v20, 0.0 }
 0xe6f   : > { %1114 = vadd.xlane.f32.xlu0 %v1113_v22 }
 0xe85   : > { %1233 = vrot.lane.b32.xlu0 %v1222_v6, %s2126_s28  ;;  %s2142_s28 = smov 16  }
 0xeb5   : > { %v1231_v23 = vpop.permute.xlu1 %1230 }
 0xeb6   : > { %v1232_v28 = vsel %vm625_vm4, %v1231_v23, %v1225_v12 }
 0xeb9   : > { %v1120_v24 = vpop.permute.xlu1 %1119 }
 0xeba   : > { %v1125_v25 = vsel %vm581_vm2, %v1120_v24, 0 }
 0xebb   : > { %1902 = vmatpush3.bf16.msra.mxu0 %v1125_v25 }
 0xebc   : > { %1913 = vmatprep.subr.bf16.mxu0 %v2124_v8 }
 0xebd   : > { %v1252_v33 = vpop.permute.xlu1 %1251 }
 0xebe   : > { %v1258_v37 = vsel %vm577_vm3, %v1252_v33, 0 }
 0xefc   : > { %v1115_v26 = vpop.xlane.xlu0 %1114 }
 0xefd   : > { %2048 = vrcp.f32 %v1115_v26 }
 0xf00   : > { %v1234_v29 = vpop.permute.xlu0 %1233 }
 0xf01   : > { %v1236_v30 = vsel %vm2357_vm6, %v1232_v28, %v1234_v29 }
 0xf02   : > { %1238 = vrot.lane.b32.xlu0 %v1236_v30, %s2131_s26  ;;  %s2143_s26 = smov 40  }
 0xf07   : > { %v2049_v31 = vpop.eup %2048 }
 0xf08   : > { %v1117_v32 = vmul.f32 %v2049_v31, %v2047_v20  ;;  %v2026_v31 = vld [vmem:[%s2676_s10] sm:$0xff]  }
 0xf0a   : > { %v1118_v34 = vpack.c.bf16 %v1117_v32, %v1117_v32 }
 0xf0c   : > { %1904 = vmatmul.mubr.msk.bf16.vlgmr.msra.gmra.mrb[12].mxu0 %vm577_vm3, %v1118_v34 }
 0xf0d   : > { %1914 = vmatpush3.bf16.xpose.msra.mxu0 %v1258_v37  ;;  %1915 = vmatprep.mubr.msk.bf16.mxu0 %vm2125_vm1, %v2124_v8 }
 0xf0e   : > { %1925 = vmatprep.subr.bf16.mxu0 %v2124_v8 }
 0xf14   : > { %1916 = vmatmul.mubr.msk.bf16.vlgmr.msra.gmra.mrb[16].mxu0 %vm577_vm3, %v2466_v35 }
 0xf15   : > { %1929 = vmatprep.mubr.msk.bf16.mxu0 %vm2125_vm1, %v2124_v8 }
 0xf74   : > { %v1239_v60 = vpop.permute.xlu0 %1238 }
 0xf75   : > { %1241 = vrot.lane.b32.xlu1 %v1239_v60, %s2127_s18 }
 0xf79   : > { %1247 = vrot.lane.b32.xlu1 %v1236_v30, %s2705_s27 }
 0xfdf   : > { %v1161_v38 = vpop.f32.mrb[12].mxu0 }
 0xfe0   : > { %v1905_v40 = vpop.f32.mrb[13].mxu0 }
 0xfe1   : > { %v1164_v21 = vpop.f32.mrb[14].mxu0  ;;  %v1785_v40 = vld [vmem:[%s2675_s9] ss:$0 sm:$0xff] }
 0xfe2   : > { %v1906_v41 = vpop.f32.mrb[15].mxu0 }
 0xfe7   : > { %v1294_v42 = vpop.f32.mrb[16].mxu0  ;;  %v1242_v44 = vpop.permute.xlu1 %1241 }
 0xfe8   : > { %v1917_v45 = vpop.f32.mrb[17].mxu0  ;;  %v1243_v46 = vsel %vm625_vm4, %v1242_v44, %v1239_v60  ;;  %v2028_v44 = vld [vmem:[%s2678_s12] sm:$0xff]  }
 0xfe9   : > { %v1297_v48 = vpop.f32.mrb[18].mxu0  ;;  %1244 = vrot.lane.b32.xlu0 %v1243_v46, %s2127_s18  ;;  %v2029_v45 = vld [vmem:[%s2678_s12 + $0x8] sm:$0xff]   ;;  %v2030_v46 = vld [vmem:[%s2678_s12 + $0x10] sm:$0xff]  }
 0xfea   : > { %v1918_v35 = vpop.f32.mrb[19].mxu0  ;;  %v2031_v48 = vld [vmem:[%s2678_s12 + $0x18] sm:$0xff]  }
 0xfeb   : > { %v1248_v50 = vpop.permute.xlu1 %1247  ;;  %v2032_v35 = vld [vmem:[%s2678_s12 + $0x20] sm:$0xff]  }
0x105b   : > { %v1245_v49 = vpop.permute.xlu0 %1244 }
0x105c   : > { %v1246_v51 = vsel %vm625_vm4, %v1245_v49, %v1239_v60  ;;  %v1784_v60 = vld [vmem:[%s2674_s8] ss:$0 sm:$0xff]  ;;  %v2033_v49 = vld [vmem:[%s2678_s12 + $0x28] sm:$0xff]  }
0x105d   : > { %v1250_v52 = vsel %vm2373_vm7, %v1246_v51, %v1248_v50  ;;  %v2034_v50 = vld [vmem:[%s2678_s12 + $0x30] sm:$0xff]   ;;  %v2035_v51 = vld [vmem:[%s2678_s12 + $0x38] sm:$0xff]  }
0x105e   : > { %1254 = vrot.lane.b32.xlu0 %v1250_v52, %s2703_s21  ;;  %v1786_v52 = vld [vmem:[%s2677_s11] ss:$0 sm:$0xff] }
0x10d0   : > { %v1255_v53 = vpop.permute.xlu0 %1254 }
0x10d1   : > { %v1295_v54 = vadd.f32 %v1294_v42, %v1255_v53 }
0x10d3   : > { %v1300_v55 = vmul.f32 0.35355338, %v1295_v54 }
0x10d5   : > { %v1301_v56 = vsel %vm569_vm8, %v1300_v55, -1e+30 }
0x10d6   : > { %v1302_v57 = vsel %vm577_vm3, %v1301_v56, -inf }
0x10d7   : > { %1303 = vmax.xlane.f32.xlu1 %v1302_v57 }
0x10e8   : > { %1363 = vrot.lane.b32.xlu1 %v2478_v43, %s2127_s18  ;;  %s1800_s18 = sshll.u32 %s2243_s17, 7  ;;  %s1684_s17 = scalar_lea.sflag [#allocation3], %s456_s0 }
0x10e9   : > { %s2623_s2 = scalar_lea.hbm %s2680_s14, %s1800_s18 }
0x10ec   : > { %1367 = vrot.lane.b32.xlu1 %v1161_v38, %s2142_s28  ;;  %s2146_s28 = smov [#allocation2]  }
0x1164   : > { %v1304_v58 = vpop.xlane.xlu1 %1303 }
0x1165   : > { %v1305_v9 = vsub.f32 %v1301_v56, %v1304_v58 }
0x1167   : > { %v1306_v59 = vmul.f32 1.442695, %v1305_v9 }
0x1168   : > { %v1364_v10 = vpop.permute.xlu1 %1363 }
0x1169   : > { %2050 = vpow2.f32 %v1306_v59  ;;  %v1374_v12 = vsel %vm577_vm3, %v2427_v47, %v1364_v10 }
0x116c   : > { %v1368_v11 = vpop.permute.xlu1 %1367 }
0x116d   : > { %v1376_v13 = vsel %vm1375_vm9, %v1374_v12, %v1368_v11  ;;  %v2145_v12 = vmov -1.0  }
0x1173   : > { %v2051_v61 = vpop.eup %2050 }
0x1174   : > { %v1308_v62 = vsel %vm577_vm3, %v2051_v61, 0.0 }
0x1175   : > { %1309 = vadd.xlane.f32.xlu0 %v1308_v62 }
0x118b   : > { %1314 = vrot.lane.b32.xlu0 %v2315_v27, %s2143_s26  ;;  %v2024_v27 = vld [vmem:[%s2672_s6] sm:$0xff]   ;;  %s2064_s26 = sshll.u32 %s2146_s28, 4  ;;  %s2065_s26 = int_to_ptr.vmem [resolvable:$false] %s2064_s26 }
0x118c   : > { %1926 = vmatpush3.bf16.msra.mxu0 %v2024_v27  ;;  %s2066_s3 = scalar_lea.vmem %s2065_s26, 256 }
0x118d   : > { %1927 = vmatprep.subr.bf16.mxu0 %v2124_v8 }
0x1190   : > { %1928 = vmatpush3.bf16.msra.mxu0 %v2025_v3 }
0x1191   : > { %1941 = vmatprep.subr.bf16.mxu0 %v2124_v8 }
0x1202   : > { %v1310_v36 = vpop.xlane.xlu0 %1309 }
0x1203   : > { %2052 = vrcp.f32 %v1310_v36 }
0x1206   : > { %v1315_v17 = vpop.permute.xlu0 %1314 }
0x1207   : > { %v1320_v63 = vsel %vm581_vm2, %v1315_v17, 0 }
0x1208   : > { %1920 = vmatpush3.bf16.msra.mxu1 %v1320_v63 }
0x1209   : > { %1933 = vmatprep.subr.bf16.mxu1 %v2124_v8 }
0x120d   : > { %v2053_v43 = vpop.eup %2052 }
0x120e   : > { %v1312_v1 = vmul.f32 %v2053_v43, %v2051_v61 }
0x1210   : > { %v1313_v2 = vpack.c.bf16 %v1312_v1, %v1312_v1 }
0x1212   : > { %1922 = vmatmul.mubr.msk.bf16.vlgmr.msra.gmra.mrb[28].mxu1 %vm577_vm3, %v1313_v2 }
0x1213   : > { %1937 = vmatprep.mubr.msk.bf16.mxu1 %vm2125_vm1, %v2124_v8  ;;  %1934 = vmatpush3.bf16.msra.mxu1 %v2026_v31 }
0x1214   : > { %1935 = vmatprep.subr.bf16.mxu1 %v2124_v8 }
0x12e5   : > { %v1356_v4 = vpop.f32.mrb[28].mxu1 }
0x12e6   : > { %1371 = vrot.lane.b32.xlu0 %v1356_v4, %s2144_s25  ;;  %v1923_v5 = vpop.f32.mrb[29].mxu1  ;;  %s1760_s25 = sshll.u32 %s456_s0, 3 }
0x12e7   : > { %v1359_v6 = vpop.f32.mrb[30].mxu1  ;;  %s458_s21 = scalar_lea.vmem [#allocation2], %s1760_s25 }
0x12e8   : > { %v1924_v7 = vpop.f32.mrb[31].mxu1  ;;  %s1697_s27 = sshll.u32 %s458_s21, 4  ;;  %s2625_s27 = int_to_ptr.vmem [resolvable:$true] %s1697_s27 }
0x12e9   : > { %s2060_s25 = scalar_lea.vmem %s2625_s27, 128  ;;  %p2067_p0 = scmp.lt.s32.totalorder %s2625_s27, %s2065_s26 }
0x12ea   : > { %p2061_p11 = scmp.ne.s32.totalorder %s2625_s27, %s2060_s25  ;;  %p2068_p1 = scmp.lt.s32.totalorder %s2066_s3, %s2060_s25 }
0x12ec   : > { %p2062_p12 = pnand %p2061_p11, %p2260_p5  ;;  %p2069_p2 = por %p2068_p1, %p2067_p0 }
0x12ee   : > { %p2063_p13 = pneg %p2062_p12 }
0x12f0   : > { %p2070_p3 = pnand %p2069_p2, %p2063_p13 }
0x1358   : > { %v1372_v14 = vpop.permute.xlu0 %1371 }
0x1359   : > { %v1378_v15 = vsel %vm1377_vm10, %v1376_v13, %v1372_v14 }
0x135a   : > { %v1379_v16 = vpack.c.bf16 %v1378_v15, %v1378_v15 }
0x135c   : > { %1930 = vmatmul.mubr.msk.bf16.vlgmr.msra.gmra.mrb[20].mxu0 %vm467_vm0, %v1379_v16 }
0x135d   : > { %1957 = vmatprep.mubr.msk.bf16.mxu0 %vm2125_vm1, %v2124_v8  ;;  %1942 = vmatpush3.bf16.msra.mxu0 %v2028_v44 }
0x135e   : > { %1943 = vmatprep.subr.bf16.mxu0 %v2124_v8 }
0x1361   : > { %1944 = vmatpush3.bf16.msra.mxu0 %v2029_v45 }
0x1362   : > { %1945 = vmatprep.subr.bf16.mxu0 %v2124_v8 }
0x1365   : > { %1946 = vmatpush3.bf16.msra.mxu0 %v2030_v46 }
0x1366   : > { %1947 = vmatprep.subr.bf16.mxu0 %v2124_v8 }
0x1369   : > { %1948 = vmatpush3.bf16.msra.mxu0 %v2031_v48 }
0x136a   : > { %1949 = vmatprep.subr.bf16.mxu0 %v2124_v8 }
0x136d   : > { %1950 = vmatpush3.bf16.msra.mxu0 %v2032_v35 }
0x136e   : > { %1951 = vmatprep.subr.bf16.mxu0 %v2124_v8 }
0x1371   : > { %1952 = vmatpush3.bf16.msra.mxu0 %v2033_v49 }
0x1372   : > { %1953 = vmatprep.subr.bf16.mxu0 %v2124_v8 }
0x1375   : > { %1954 = vmatpush3.bf16.msra.mxu0 %v2034_v50 }
0x1376   : > { %1955 = vmatprep.subr.bf16.mxu0 %v2124_v8 }
0x1379   : > { %1956 = vmatpush3.bf16.msra.mxu0 %v2035_v51 }
0x142f   : > { %v1440_v18 = vpop.f32.mrb[20].mxu0 }
0x1430   : > { %v1441_v19 = vadd.f32 %v1780_v39, %v1440_v18  ;;  %v1931_v20 = vpop.f32.mrb[21].mxu0 }
0x1431   : > { %v1443_v22 = vpop.f32.mrb[22].mxu0 }
0x1432   : > { %v2560_v23 = vadd.f32 %v1441_v19, %v2275_v0  ;;  %v1932_v47 = vpop.f32.mrb[23].mxu0  ;;  %v2027_v0 = vld [vmem:[%s2676_s10 + $0x8] sm:$0xff]   ;;  %v1790_v19 = vld [vmem:[%s2679_s13] ss:$0 sm:$0xff] }
0x1433   : > { %1936 = vmatpush3.bf16.msra.mxu1 %v2027_v0 }
0x1434   : > { %v1449_v24 = vsel %vm467_vm0, %v2560_v23, 0.0 }
0x1435   : > { %1450 = vadd.xlane.f32.xlu1 %v1449_v24 }
0x14c2   : > { %v1451_v25 = vpop.xlane.xlu1 %1450 }
0x14c3   : > { %v1452_v26 = vmul.f32 0.03125, %v1451_v25 }
0x14c5   : > { %v1453_v28 = vsub.f32 %v2560_v23, %v1452_v26 }
0x14c7   : > { %v1454_v29 = vmul.f32 %v1453_v28, %v1453_v28 }
0x14c9   : > { %v1455_v30 = vsel %vm467_vm0, %v1454_v29, 0.0 }
0x14ca   : > { %1456 = vadd.xlane.f32.xlu0 %v1455_v30 }
0x1557   : > { %v1457_v32 = vpop.xlane.xlu0 %1456 }
0x1558   : > { %v1458_v33 = vmul.f32 0.03125, %v1457_v32 }
0x155a   : > { %v1459_v34 = vadd.f32 1e-05, %v1458_v33 }
0x155c   : > { %2054 = vrsqrt.f32 %v1459_v34 }
0x1566   : > { %v2055_v37 = vpop.eup %2054 }
0x1567   : > { %v1461_v38 = vmul.f32 %v2055_v37, %v1453_v28 }
0x1569   : > { %v1468_v21 = vmul.f32 %v1784_v60, %v1461_v38 }
0x156b   : > { %v1475_v41 = vadd.f32 %v1785_v40, %v1468_v21 }
0x156d   : > { %v1476_v42 = vpack.c.bf16 %v1475_v41, %v1475_v41 }
0x156f   : > { %1938 = vmatmul.mubr.msk.bf16.vlgmr.msra.gmra.mrb[32].mxu1 %vm467_vm0, %v1476_v42 }
0x1642   : > { %v1537_v53 = vpop.f32.mrb[32].mxu1 }
0x1643   : > { %v1538_v54 = vadd.f32 %v1786_v52, %v1537_v53  ;;  %v1939_v55 = vpop.f32.mrb[33].mxu1 }
0x1644   : > { %v1540_v56 = vpop.f32.mrb[34].mxu1 }
0x1645   : > { %v1544_v57 = vmul.f32 0.70710677, %v1538_v54  ;;  %v1940_v58 = vpop.f32.mrb[35].mxu1  ;;  %v1543_v15 = vmul.f32 0.5, %v1538_v54 }
0x1647   : > { %v1547_v9 = vand.u32 2147483647, %v1544_v57  ;;  %vm1545_vm11 = vcmp.ge.f32.partialorder %v1544_v57, 0.0 }
0x1648   : > { %v1546_v13 = vsel %vm1545_vm11, 1.0, %v2145_v12 }
0x1649   : > { %v1548_v59 = vmul.f32 0.3275911, %v1547_v9  ;;  %v1560_v8 = vsub.f32 0.0, %v1547_v9 }
0x164b   : > { %v1549_v61 = vadd.f32 1.0, %v1548_v59  ;;  %v1561_v36 = vmul.f32 %v1560_v8, %v1547_v9 }
0x164d   : > { %2056 = vrcp.f32 %v1549_v61  ;;  %v1562_v43 = vmul.f32 1.442695, %v1561_v36 }
0x164f   : > { %2058 = vpow2.f32 %v1562_v43 }
0x1657   : > { %v2057_v62 = vpop.eup %2056 }
0x1658   : > { %v1551_v17 = vmul.f32 1.0614054, %v2057_v62 }
0x1659   : > { %v2059_v7 = vpop.eup %2058 }
0x165a   : > { %v1552_v63 = vadd.f32 -1.4531521, %v1551_v17 }
0x165c   : > { %v1553_v1 = vmul.f32 %v2057_v62, %v1552_v63 }
0x165e   : > { %v1554_v2 = vadd.f32 1.4214138, %v1553_v1 }
0x1660   : > { %v1555_v27 = vmul.f32 %v2057_v62, %v1554_v2 }
0x1662   : > { %v1556_v3 = vadd.f32 -0.28449672, %v1555_v27 }
0x1664   : > { %v1557_v4 = vmul.f32 %v2057_v62, %v1556_v3 }
0x1666   : > { %v1558_v5 = vadd.f32 0.2548296, %v1557_v4 }
0x1668   : > { %v1559_v6 = vmul.f32 %v2057_v62, %v1558_v5 }
0x166a   : > { %v1564_v10 = vmul.f32 %v2059_v7, %v1559_v6 }
0x166c   : > { %v1565_v11 = vsub.f32 1.0, %v1564_v10 }
0x166e   : > { %v1566_v14 = vmul.f32 %v1565_v11, %v1546_v13 }
0x1670   : > { %v1567_v16 = vadd.f32 1.0, %v1566_v14 }
0x1672   : > { %v1568_v39 = vmul.f32 %v1567_v16, %v1543_v15 }
0x1674   : > { %v1569_v18 = vpack.c.bf16 %v1568_v39, %v1568_v39 }
0x1676   : > { %1958 = vmatmul.mubr.bf16.vlgmr.msra.gmra.mrb[24].mxu0 %v1569_v18 }
0x1749   : > { %v1675_v20 = vpop.f32.mrb[24].mxu0 }
0x174a   : > { %v1676_v22 = vadd.f32 %v1790_v19, %v1675_v20  ;;  %v1959_v47 = vpop.f32.mrb[25].mxu0 }
0x174b   : > { %v1678_v24 = vpop.f32.mrb[26].mxu0 }
0x174c   : > { %v1681_v25 = vadd.f32 %v1676_v22, %v2560_v23  ;;  %v1960_v26 = vpop.f32.mrb[27].mxu0 }
0x174e   : > { %1682 = vst.msk [vmem:[%s458_s21] sm:$0xff] %vm467_vm0, %v1681_v25 }
0x174f   : > { %2073 = shalt.err (!%p2070_p3)
}
0x1750   : > { %s2074_s1 = scalar_lea.hbm %s2623_s2, 128  ;;  %s2078_s21 = scalar_lea.hbm %s2680_s14, 256 }
0x1751   : > { %p2075_p4 = scmp.ne.s32.totalorder %s2623_s2, %s2074_s1  ;;  %p2079_p9 = scmp.lt.u32.totalorder %s2623_s2, %s2680_s14 }
0x1752   : > { %p2080_p10 = scmp.lt.u32.totalorder %s2078_s21, %s2074_s1  ;;  %p2082_p12 = scmp.lt.u32.totalorder %s2074_s1, %s2623_s2 }
0x1753   : > { %p2076_p7 = pnand %p2075_p4, %p2260_p5 }
0x1754   : > { %p2081_p11 = por %p2080_p10, %p2079_p9 }
0x1755   : > { %p2077_p8 = pneg %p2076_p7 }
0x1756   : > { %p2083_p13 = por %p2082_p12, %p2081_p11 }
0x1758   : > { %p2084_p0 = pnand %p2083_p13, %p2077_p8 }
0x175a   : > { %2087 = shalt.err (!%p2084_p0)
}
0x175b   : > { %1961 = dma.vmem_to_hbm [thread:$0]  (%p2260_p5), %s2625_s27, 128, %s2623_s2, %s1684_s17  }
0x175c PF: > { %p1967_p1 = scmp.ge.s32.totalorder %s2122_s16, 2  ;;  %s1709_s3 = sand.u32 1, %s2110_s29  }
0x175d   : > { %s1710_s25 = scalar_lea.sflag [#allocation3], %s1709_s3 }
0x175e   : > { %p1964_p2 = pnand %p1967_p1, %p2264_p6 }
0x1760   : > { %2105 = dma.done.wait (!%p1964_p2), %s1710_s25, 128  }
0x1761   : > { %2107 = vsyncadd (!%p1964_p2), %s1710_s25, 4294967168  ;;  %p24_p3 = scmp.ge.s32.totalorder %s2247_s19, 4   ;;  %s2706_s29 = smov %s2114_s30 }
0x1762   : > { %s2707_s30 = smov %s2118_s15  ;;  %s2708_s15 = smov %s2258_s22 }
0x1763   : > { %s2709_s16 = smov %s2247_s19  ;;  %26 = sbr.rel (!%p24_p3) target bundleno = 8 (0x8), region = 111 }
0x176a   :  { %1715 = vsyncpa [#allocation3], 1 }
0x176b   :  { %1717 = vsyncpa [#allocation3 + $0x1], 1 }

</bundles_post_ra>
